<compile_context>
chip_gen: v7x
topology: tpu7x:2x2x1
jax: 0.10.0
libtpu: 0.0.40
codegen_flags: <defaults>
</compile_context>

<pallas_src>
import math

import numpy as np
import jax
import jax.numpy as jnp
from jax import lax
from jax.experimental import pallas as pl
from jax.experimental.pallas import tpu as pltpu

# ----------------------- configuration (Mamba defaults, small sizes) -----------------
D_MODEL = 32                       # dim
D_STATE = 16                       # Mamba default
D_CONV = 4                         # Mamba default
EXPAND = 2                         # Mamba default
D_INNER = EXPAND * D_MODEL         # 64
DT_RANK = math.ceil(D_MODEL / 16)  # 2
LN_EPS = 1e-5                      # nn.LayerNorm default


def _silu(v):
    # sigmoid via the approx EUP reciprocal: the divide moves off the VALU.
    return v * pl.reciprocal(1.0 + jnp.exp(-v), approx=True)


# ----------------------- single fused kernel: Add -> LN -> Mamba mixer ----------------
def _make_block_kernel(seqlen, has_residual):
    L = seqlen

    def body(h_ref, r_ref, lnw_ref, lnb_ref, inw_ref, cw_ref, cb_ref,
             xdw_ref, dtb_ref, At_ref, Dp_ref, ow_ref, out_ref, resid_ref):
        # ---- residual add (skipped when residual is None) + LayerNorm ----
        res = h_ref[...] + r_ref[...] if has_residual else h_ref[...]      # (L, D)
        resid_ref[...] = res
        mean = jnp.mean(res, axis=-1, keepdims=True)
        cent = res - mean
        var = jnp.mean(cent * cent, axis=-1, keepdims=True)
        normed = cent * lax.rsqrt(var + LN_EPS) * lnw_ref[...] + lnb_ref[...]

        # ---- in_proj (merged x|z weight; bf16 operands, f32 accumulate) ----
        xz = jnp.dot(normed.astype(jnp.bfloat16), inw_ref[...],
                     preferred_element_type=jnp.float32)                   # (L, 2*d_inner)
        x = xz[:, :D_INNER]                                                # (L, d_inner)
        z = xz[:, D_INNER:]                                                # (L, d_inner)

        # ---- causal depthwise conv1d: zero-pad once, D_CONV shifted-view VPU FMAs ----
        cw = cw_ref[...]                                                   # (d_conv, d_inner)
        x_pad = jnp.concatenate(
            [jnp.zeros((D_CONV - 1, D_INNER), jnp.float32), x], axis=0)   # (L+d_conv-1, d_inner)
        acc = cb_ref[...] + x * cw[D_CONV - 1:D_CONV, :]                   # tap k = d_conv-1 (shift 0)
        for k in range(D_CONV - 1):                                        # taps with shift > 0
            acc = acc + x_pad[k:k + L, :] * cw[k:k + 1, :]
        x_act = _silu(acc)                                                 # SiLU

        # ---- merged x_proj (+ host-folded dt_proj) -> [delta_pre | B | C] ----
        dbc = jnp.dot(x_act.astype(jnp.bfloat16), xdw_ref[...],
                      preferred_element_type=jnp.float32)                  # (L, d_inner+2*d_state)
        delta_pre = dbc[:, :D_INNER]
        Bm = dbc[:, D_INNER:D_INNER + D_STATE]
        Cm = dbc[:, D_INNER + D_STATE:]
        delta = delta_pre + dtb_ref[...]
        delta = jnp.maximum(delta, 0.0) + jnp.log(1.0 + jnp.exp(-jnp.abs(delta)))  # softplus

        # ---- selective scan: everything except the recurrence is hoisted ----
        At = At_ref[...]                                                   # (d_state, d_inner) = A.T
        du = delta * x_act
        dA_all = jnp.exp(delta[:, None, :] * At[None, :, :])               # (L, d_state, d_inner)  bulk EUP
        dBu_all = Bm[:, :, None] * du[:, None, :]                          # (L, d_state, d_inner)
        CmT = Cm.T                                                         # (d_state, L), one transpose

        H = jnp.zeros((D_STATE, D_INNER), jnp.float32)
        ys = []
        # TODO(synk): switch to lax.fori_loop(+ VMEM scratch writes) once L > ~32.
        for l in range(L):                                                 # serial recurrence: FMA + contract
            H = dA_all[l] * H + dBu_all[l]
            ys.append(jnp.sum(H * CmT[:, l:l + 1], axis=0, keepdims=True))
        y = jnp.concatenate(ys, axis=0)                                    # (L, d_inner), one reg concat

        y = y + x_act * Dp_ref[...]                                        # D skip connection
        y = y * _silu(z)                                                   # gate with SiLU(z)

        # ---- out_proj (bf16 operands, f32 accumulate) ----
        out_ref[...] = jnp.dot(y.astype(jnp.bfloat16), ow_ref[...],
                               preferred_element_type=jnp.float32)

    if has_residual:
        return body

    def kernel(h_ref, *rest):
        return body(h_ref, None, *rest)

    return kernel


# ----------------------- host-side weight preparation (done once per model) -----------
def prepare_block_weights(params):
    """Merge / fold / transpose / cast weights into the kernel-ready layout (once)."""
    xw = params["x_proj_w"]                                                # (d_inner, dt_rank+2*d_state)
    dtw = params["dt_w"]                                                   # (dt_rank, d_inner)
    # Fold dt_proj into x_proj: (x @ Wx[:, :r]) @ Wdt == x @ (Wx[:, :r] @ Wdt).
    xd_w = jnp.concatenate([xw[:, :DT_RANK] @ dtw, xw[:, DT_RANK:]], axis=1)
    return {
        "ln_w": params["ln_w"].reshape(1, D_MODEL),
        "ln_b": params["ln_b"].reshape(1, D_MODEL),
        "in_w": params["in_w"].astype(jnp.bfloat16),                       # (d_model, 2*d_inner)
        "conv_w": params["conv_w"],                                        # (d_conv, d_inner), f32
        "conv_b": params["conv_b"],                                        # (1, d_inner), f32
        "xd_w": xd_w.astype(jnp.bfloat16),                                 # (d_inner, d_inner+2*d_state)
        "dt_b": params["dt_b"],                                            # (1, d_inner), f32
        "A_t": params["A_t"],                                              # (d_state, d_inner), f32
        "D": params["D"],                                                  # (1, d_inner), f32
        "out_w": params["out_w"].astype(jnp.bfloat16),                     # (d_inner, d_model)
    }


# ----------------------- Block forward (Add -> LN -> Mixer, one pallas_call) ----------
def block_forward(prepared, hidden_states, residual=None):
    batch, seqlen, dim = hidden_states.shape
    BL = batch * seqlen
    has_residual = residual is not None

    row_spec = pl.BlockSpec((seqlen, dim), lambda b: (b, 0))

    h2 = hidden_states.reshape(BL, dim)
    args = [h2]
    in_specs = [row_spec]
    if has_residual:
        args.append(residual.reshape(BL, dim))
        in_specs.append(row_spec)

    def wspec(arr):
        return pl.BlockSpec(arr.shape, lambda b: (0, 0))                   # resident across grid

    weights = [prepared["ln_w"], prepared["ln_b"], prepared["in_w"],
               prepared["conv_w"], prepared["conv_b"], prepared["xd_w"],
               prepared["dt_b"], prepared["A_t"], prepared["D"], prepared["out_w"]]
    args += weights
    in_specs += [wspec(w) for w in weights]

    out2, resid2 = pl.pallas_call(
        _make_block_kernel(seqlen, has_residual),
        out_shape=(jax.ShapeDtypeStruct((BL, dim), jnp.float32),
                   jax.ShapeDtypeStruct((BL, dim), jnp.float32)),
        grid=(batch,),
        in_specs=in_specs,
        out_specs=(row_spec, row_spec),
        compiler_params=pltpu.CompilerParams(
            dimension_semantics=("parallel",)),                            # megacore on v7x
    )(*args)
    return out2.reshape(batch, seqlen, dim), resid2.reshape(batch, seqlen, dim)


# ----------------------- deterministic parameter init ---------------------------------
def init_params(key):
    ks = jax.random.split(key, 8)

    def lin(k, shape, fan_in):
        return jax.random.normal(k, shape, jnp.float32) / np.sqrt(float(fan_in))

    # A_log = log(arange(1, d_state+1)) broadcast over d_inner (Mamba init); A = -exp(A_log)
    A = -jnp.exp(jnp.log(jnp.tile(jnp.arange(1, D_STATE + 1, dtype=jnp.float32)[None, :],
                                  (D_INNER, 1))))                           # (d_inner, d_state)
    return {
        "ln_w": jnp.ones((D_MODEL,), jnp.float32),
        "ln_b": jnp.zeros((D_MODEL,), jnp.float32),
        # in_proj.weight is (2*d_inner, d_model); stored pre-transposed + x|z merged
        "in_w": lin(ks[0], (D_MODEL, 2 * D_INNER), D_MODEL),
        # conv1d.weight is (d_inner, 1, d_conv) depthwise; stored as (d_conv, d_inner)
        "conv_w": lin(ks[1], (D_CONV, D_INNER), D_CONV),
        "conv_b": 0.1 * jax.random.normal(ks[2], (1, D_INNER), jnp.float32),
        # x_proj.weight is (dt_rank + 2*d_state, d_inner); stored transposed, merged [dt|B|C]
        "x_proj_w": lin(ks[3], (D_INNER, DT_RANK + 2 * D_STATE), D_INNER),
        # dt_proj.weight is (d_inner, dt_rank); stored transposed; bias as (1, d_inner)
        "dt_w": lin(ks[4], (DT_RANK, D_INNER), DT_RANK),
        "dt_b": 0.1 * jnp.ones((1, D_INNER), jnp.float32),
        "A_t": A.T,                                                         # (d_state, d_inner)
        "D": jnp.ones((1, D_INNER), jnp.float32),
        # out_proj.weight is (d_model, d_inner); stored transposed
        "out_w": lin(ks[5], (D_INNER, D_MODEL), D_INNER),
    }


# ----------------------- pure-numpy (float64) reference --------------------------------
def reference_block(params, hidden, residual):
    g = lambda n: np.asarray(params[n], np.float64)
    h = np.asarray(hidden, np.float64)
    r = np.asarray(residual, np.float64)
    res = h + r
    mean = res.mean(-1, keepdims=True)
    var = ((res - mean) ** 2).mean(-1, keepdims=True)
    normed = (res - mean) / np.sqrt(var + LN_EPS) * g("ln_w") + g("ln_b")

    silu = lambda v: v / (1.0 + np.exp(-v))
    B, L, D = h.shape
    A = g("A_t").T                                                          # (d_inner, d_state)
    out = np.zeros((B, L, D))
    for b in range(B):
        hb = normed[b]
        xz = hb @ g("in_w")
        x = xz[:, :D_INNER]
        z = xz[:, D_INNER:]
        xc = np.zeros_like(x)
        for l in range(L):
            for k in range(D_CONV):
                src = l - (D_CONV - 1) + k
                if src >= 0:
                    xc[l] += g("conv_w")[k] * x[src]
        xc += g("conv_b")[0]
        x_act = silu(xc)
        dbc = x_act @ g("x_proj_w")
        dt = dbc[:, :DT_RANK]
        Bm = dbc[:, DT_RANK:DT_RANK + D_STATE]
        Cm = dbc[:, DT_RANK + D_STATE:]
        delta = dt @ g("dt_w") + g("dt_b")[0]
        delta = np.log1p(np.exp(delta))
        hst = np.zeros((D_INNER, D_STATE))
        ys = []
        for i in range(L):
            dA = np.exp(delta[i][:, None] * A)
            dBu = delta[i][:, None] * Bm[i][None, :] * x_act[i][:, None]
            hst = dA * hst + dBu
            ys.append((hst * Cm[i][None, :]).sum(-1))
        y = np.stack(ys, 0)
        y = y + x_act * g("D")[0]
        y = y * silu(z)
        out[b] = y @ g("out_w")
    return out, res


# ----------------------- main ----------------------------------------------------------
if __name__ == "__main__":
    key = jax.random.PRNGKey(0)
    kp, kh, kr = jax.random.split(key, 3)
    params = init_params(kp)
    prepared = prepare_block_weights(params)   # host-side, once (folds dt_proj, bf16 casts)

    B, L = 2, 8
    hidden = jax.random.normal(kh, (B, L, D_MODEL), jnp.float32)
    residual = jax.random.normal(kr, (B, L, D_MODEL), jnp.float32)

    # residual path
    out, resid_out = block_forward(prepared, hidden, residual)
    out = jax.block_until_ready(out)
    resid_out = jax.block_until_ready(resid_out)
    ref_out, ref_res = reference_block(params, hidden, residual)
    # residual output is an exact f32 add -> tight tolerance
    np.testing.assert_allclose(np.asarray(resid_out), ref_res, rtol=1e-5, atol=1e-6)
    # mixer output uses bf16 MXU operands + approx EUP reciprocal -> looser tolerance
    np.testing.assert_allclose(np.asarray(out), ref_out, rtol=5e-2, atol=1e-2)

    # first-block path (residual=None): residual output must equal the input
    out0, resid0 = block_forward(prepared, hidden, None)
    out0 = jax.block_until_ready(out0)
    ref_out0, _ = reference_block(params, hidden, np.zeros((B, L, D_MODEL)))
    np.testing.assert_allclose(np.asarray(resid0), np.asarray(hidden), rtol=1e-6, atol=1e-6)
    np.testing.assert_allclose(np.asarray(out0), ref_out0, rtol=5e-2, atol=1e-2)

    print("KERNEL_OK")
</pallas_src>

<mosaic_0001>
module attributes {stable_mosaic.version = 11 : i64} {
  func.func @body(%arg0: i32, %arg1: memref<8x32xf32, #tpu.memory_space<vmem>>, %arg2: memref<8x32xf32, #tpu.memory_space<vmem>>, %arg3: memref<1x32xf32, #tpu.memory_space<vmem>>, %arg4: memref<1x32xf32, #tpu.memory_space<vmem>>, %arg5: memref<32x128xbf16, #tpu.memory_space<vmem>>, %arg6: memref<4x64xf32, #tpu.memory_space<vmem>>, %arg7: memref<1x64xf32, #tpu.memory_space<vmem>>, %arg8: memref<64x96xbf16, #tpu.memory_space<vmem>>, %arg9: memref<1x64xf32, #tpu.memory_space<vmem>>, %arg10: memref<16x64xf32, #tpu.memory_space<vmem>>, %arg11: memref<1x64xf32, #tpu.memory_space<vmem>>, %arg12: memref<64x32xbf16, #tpu.memory_space<vmem>>, %arg13: memref<8x32xf32, #tpu.memory_space<vmem>>, %arg14: memref<8x32xf32, #tpu.memory_space<vmem>>) attributes {dimension_semantics = [#tpu.dimension_semantics<parallel>], iteration_bounds = array<i64: 2>, scalar_prefetch = 0 : i64, scratch_operands = 0 : i64, tpu.core_type = #tpu.core_type<tc>, window_params = [{transform_indices = @transform_0, window_bounds = array<i64: 8, 32>}, {transform_indices = @transform_1, window_bounds = array<i64: 8, 32>}, {pipeline_mode = #tpu.pipeline_mode<synchronous>, transform_indices = @transform_2, window_bounds = array<i64: 1, 32>}, {pipeline_mode = #tpu.pipeline_mode<synchronous>, transform_indices = @transform_3, window_bounds = array<i64: 1, 32>}, {pipeline_mode = #tpu.pipeline_mode<synchronous>, transform_indices = @transform_4, window_bounds = array<i64: 32, 128>}, {pipeline_mode = #tpu.pipeline_mode<synchronous>, transform_indices = @transform_5, window_bounds = array<i64: 4, 64>}, {pipeline_mode = #tpu.pipeline_mode<synchronous>, transform_indices = @transform_6, window_bounds = array<i64: 1, 64>}, {pipeline_mode = #tpu.pipeline_mode<synchronous>, transform_indices = @transform_7, window_bounds = array<i64: 64, 96>}, {pipeline_mode = #tpu.pipeline_mode<synchronous>, transform_indices = @transform_8, window_bounds = array<i64: 1, 64>}, {pipeline_mode = #tpu.pipeline_mode<synchronous>, transform_indices = @transform_9, window_bounds = array<i64: 16, 64>}, {pipeline_mode = #tpu.pipeline_mode<synchronous>, transform_indices = @transform_10, window_bounds = array<i64: 1, 64>}, {pipeline_mode = #tpu.pipeline_mode<synchronous>, transform_indices = @transform_11, window_bounds = array<i64: 64, 32>}, {transform_indices = @transform_12, window_bounds = array<i64: 8, 32>}, {transform_indices = @transform_13, window_bounds = array<i64: 8, 32>}]} {
    %c0 = arith.constant 0 : index
    %c0_0 = arith.constant 0 : index
    %0 = vector.load %arg1[%c0, %c0_0] : memref<8x32xf32, #tpu.memory_space<vmem>>, vector<8x32xf32>
    %c0_1 = arith.constant 0 : index
    %c0_2 = arith.constant 0 : index
    %1 = vector.load %arg2[%c0_1, %c0_2] : memref<8x32xf32, #tpu.memory_space<vmem>>, vector<8x32xf32>
    %2 = arith.addf %0, %1 : vector<8x32xf32>
    %c0_3 = arith.constant 0 : index
    %c0_4 = arith.constant 0 : index
    %3 = vector.load %arg14[%c0_3, %c0_4] : memref<8x32xf32, #tpu.memory_space<vmem>>, vector<8x32xf32>
    tpu.vector_store %arg14[%c0_3, %c0_4], %2 {strides = array<i32>} : memref<8x32xf32, #tpu.memory_space<vmem>>, vector<8x32xf32>,
    %cst = arith.constant dense<0.000000e+00> : vector<8xf32>
    %4 = vector.multi_reduction <add>, %2, %cst [1] : vector<8x32xf32> to vector<8xf32>
    %5 = vector.shape_cast %4 : vector<8xf32> to vector<8x1xf32>
    %cst_5 = arith.constant 3.200000e+01 : f32
    %6 = vector.broadcast %cst_5 : f32 to vector<8x1xf32>
    %7 = arith.divf %5, %6 : vector<8x1xf32>
    %8 = vector.broadcast %7 : vector<8x1xf32> to vector<8x32xf32>
    %9 = arith.subf %2, %8 : vector<8x32xf32>
    %10 = arith.mulf %9, %9 : vector<8x32xf32>
    %cst_6 = arith.constant dense<0.000000e+00> : vector<8xf32>
    %11 = vector.multi_reduction <add>, %10, %cst_6 [1] : vector<8x32xf32> to vector<8xf32>
    %12 = vector.shape_cast %11 : vector<8xf32> to vector<8x1xf32>
    %cst_7 = arith.constant 3.200000e+01 : f32
    %13 = vector.broadcast %cst_7 : f32 to vector<8x1xf32>
    %14 = arith.divf %12, %13 : vector<8x1xf32>
    %cst_8 = arith.constant 9.99999974E-6 : f32
    %15 = vector.broadcast %cst_8 : f32 to vector<8x1xf32>
    %16 = arith.addf %14, %15 : vector<8x1xf32>
    %17 = math.rsqrt %16 : vector<8x1xf32>
    %18 = vector.broadcast %17 : vector<8x1xf32> to vector<8x32xf32>
    %19 = arith.mulf %9, %18 : vector<8x32xf32>
    %c0_9 = arith.constant 0 : index
    %c0_10 = arith.constant 0 : index
    %20 = vector.load %arg3[%c0_9, %c0_10] : memref<1x32xf32, #tpu.memory_space<vmem>>, vector<1x32xf32>
    %21 = vector.broadcast %20 : vector<1x32xf32> to vector<8x32xf32>
    %22 = arith.mulf %19, %21 : vector<8x32xf32>
    %c0_11 = arith.constant 0 : index
    %c0_12 = arith.constant 0 : index
    %23 = vector.load %arg4[%c0_11, %c0_12] : memref<1x32xf32, #tpu.memory_space<vmem>>, vector<1x32xf32>
    %24 = vector.broadcast %23 : vector<1x32xf32> to vector<8x32xf32>
    %25 = arith.addf %22, %24 : vector<8x32xf32>
    %26 = arith.truncf %25 : vector<8x32xf32> to vector<8x32xbf16>
    %c0_13 = arith.constant 0 : index
    %c0_14 = arith.constant 0 : index
    %27 = vector.load %arg5[%c0_13, %c0_14] : memref<32x128xbf16, #tpu.memory_space<vmem>>, vector<32x128xbf16>
    %cst_15 = arith.constant dense<0.000000e+00> : vector<8x128xf32>
    %28 = tpu.matmul %26, %27, %cst_15 {dimension_numbers = #tpu.dot_dimension_numbers<[1], [0], [0], [1], [0, 0, 1, 1], [], []>} : vector<8x32xbf16>, vector<32x128xbf16>, vector<8x128xf32> -> vector<8x128xf32>
    %29 = vector.extract_strided_slice %28 {offsets = [0, 0], sizes = [8, 64], strides = [1, 1]} : vector<8x128xf32> to vector<8x64xf32>
    %30 = vector.extract_strided_slice %28 {offsets = [0, 64], sizes = [8, 64], strides = [1, 1]} : vector<8x128xf32> to vector<8x64xf32>
    %c0_16 = arith.constant 0 : index
    %c0_17 = arith.constant 0 : index
    %31 = vector.load %arg6[%c0_16, %c0_17] : memref<4x64xf32, #tpu.memory_space<vmem>>, vector<4x64xf32>
    %cst_18 = arith.constant 0.000000e+00 : f32
    %32 = vector.broadcast %cst_18 : f32 to vector<3x64xf32>
    %33 = tpu.concatenate %32, %29 in 0 : vector<3x64xf32>, vector<8x64xf32> -> vector<11x64xf32>
    %c0_19 = arith.constant 0 : index
    %c0_20 = arith.constant 0 : index
    %34 = vector.load %arg7[%c0_19, %c0_20] : memref<1x64xf32, #tpu.memory_space<vmem>>, vector<1x64xf32>
    %35 = vector.extract_strided_slice %31 {offsets = [3, 0], sizes = [1, 64], strides = [1, 1]} : vector<4x64xf32> to vector<1x64xf32>
    %36 = vector.broadcast %35 : vector<1x64xf32> to vector<8x64xf32>
    %37 = arith.mulf %29, %36 : vector<8x64xf32>
    %38 = vector.broadcast %34 : vector<1x64xf32> to vector<8x64xf32>
    %39 = arith.addf %38, %37 : vector<8x64xf32>
    %40 = vector.extract_strided_slice %33 {offsets = [0, 0], sizes = [8, 64], strides = [1, 1]} : vector<11x64xf32> to vector<8x64xf32>
    %41 = vector.extract_strided_slice %31 {offsets = [0, 0], sizes = [1, 64], strides = [1, 1]} : vector<4x64xf32> to vector<1x64xf32>
    %42 = vector.broadcast %41 : vector<1x64xf32> to vector<8x64xf32>
    %43 = arith.mulf %40, %42 : vector<8x64xf32>
    %44 = arith.addf %39, %43 : vector<8x64xf32>
    %45 = vector.extract_strided_slice %33 {offsets = [1, 0], sizes = [8, 64], strides = [1, 1]} : vector<11x64xf32> to vector<8x64xf32>
    %46 = vector.extract_strided_slice %31 {offsets = [1, 0], sizes = [1, 64], strides = [1, 1]} : vector<4x64xf32> to vector<1x64xf32>
    %47 = vector.broadcast %46 : vector<1x64xf32> to vector<8x64xf32>
    %48 = arith.mulf %45, %47 : vector<8x64xf32>
    %49 = arith.addf %44, %48 : vector<8x64xf32>
    %50 = vector.extract_strided_slice %33 {offsets = [2, 0], sizes = [8, 64], strides = [1, 1]} : vector<11x64xf32> to vector<8x64xf32>
    %51 = vector.extract_strided_slice %31 {offsets = [2, 0], sizes = [1, 64], strides = [1, 1]} : vector<4x64xf32> to vector<1x64xf32>
    %52 = vector.broadcast %51 : vector<1x64xf32> to vector<8x64xf32>
    %53 = arith.mulf %50, %52 : vector<8x64xf32>
    %54 = arith.addf %49, %53 : vector<8x64xf32>
    %cst_21 = arith.constant 0.000000e+00 : f32
    %55 = vector.broadcast %cst_21 : f32 to vector<8x64xf32>
    %56 = arith.subf %55, %54 : vector<8x64xf32>
    %57 = math.exp %56 : vector<8x64xf32>
    %cst_22 = arith.constant 1.000000e+00 : f32
    %58 = vector.broadcast %cst_22 : f32 to vector<8x64xf32>
    %59 = arith.addf %58, %57 : vector<8x64xf32>
    %60 = tpu.reciprocal %59 {approx = true} : vector<8x64xf32> -> vector<8x64xf32>
    %61 = arith.mulf %54, %60 : vector<8x64xf32>
    %62 = arith.truncf %61 : vector<8x64xf32> to vector<8x64xbf16>
    %c0_23 = arith.constant 0 : index
    %c0_24 = arith.constant 0 : index
    %63 = vector.load %arg8[%c0_23, %c0_24] : memref<64x96xbf16, #tpu.memory_space<vmem>>, vector<64x96xbf16>
    %cst_25 = arith.constant dense<0.000000e+00> : vector<8x96xf32>
    %64 = tpu.matmul %62, %63, %cst_25 {dimension_numbers = #tpu.dot_dimension_numbers<[1], [0], [0], [1], [0, 0, 1, 1], [], []>} : vector<8x64xbf16>, vector<64x96xbf16>, vector<8x96xf32> -> vector<8x96xf32>
    %65 = vector.extract_strided_slice %64 {offsets = [0, 0], sizes = [8, 64], strides = [1, 1]} : vector<8x96xf32> to vector<8x64xf32>
    %66 = vector.extract_strided_slice %64 {offsets = [0, 64], sizes = [8, 16], strides = [1, 1]} : vector<8x96xf32> to vector<8x16xf32>
    %67 = vector.extract_strided_slice %64 {offsets = [0, 80], sizes = [8, 16], strides = [1, 1]} : vector<8x96xf32> to vector<8x16xf32>
    %c0_26 = arith.constant 0 : index
    %c0_27 = arith.constant 0 : index
    %68 = vector.load %arg9[%c0_26, %c0_27] : memref<1x64xf32, #tpu.memory_space<vmem>>, vector<1x64xf32>
    %69 = vector.broadcast %68 : vector<1x64xf32> to vector<8x64xf32>
    %70 = arith.addf %65, %69 : vector<8x64xf32>
    %cst_28 = arith.constant 0.000000e+00 : f32
    %71 = vector.broadcast %cst_28 : f32 to vector<8x64xf32>
    %72 = arith.maximumf %70, %71 : vector<8x64xf32>
    %73 = math.absf %70 : vector<8x64xf32>
    %cst_29 = arith.constant 0.000000e+00 : f32
    %74 = vector.broadcast %cst_29 : f32 to vector<8x64xf32>
    %75 = arith.subf %74, %73 : vector<8x64xf32>
    %76 = math.exp %75 : vector<8x64xf32>
    %cst_30 = arith.constant 1.000000e+00 : f32
    %77 = vector.broadcast %cst_30 : f32 to vector<8x64xf32>
    %78 = arith.addf %77, %76 : vector<8x64xf32>
    %79 = math.log %78 : vector<8x64xf32>
    %80 = arith.addf %72, %79 : vector<8x64xf32>
    %c0_31 = arith.constant 0 : index
    %c0_32 = arith.constant 0 : index
    %81 = vector.load %arg10[%c0_31, %c0_32] : memref<16x64xf32, #tpu.memory_space<vmem>>, vector<16x64xf32>
    %82 = arith.mulf %80, %61 : vector<8x64xf32>
    %83 = vector.shape_cast %80 : vector<8x64xf32> to vector<8x1x64xf32>
    %84 = vector.shape_cast %81 : vector<16x64xf32> to vector<1x16x64xf32>
    %85 = vector.broadcast %83 : vector<8x1x64xf32> to vector<8x16x64xf32>
    %86 = vector.broadcast %84 : vector<1x16x64xf32> to vector<8x16x64xf32>
    %87 = arith.mulf %85, %86 : vector<8x16x64xf32>
    %88 = math.exp %87 : vector<8x16x64xf32>
    %89 = vector.shape_cast %66 : vector<8x16xf32> to vector<8x16x1xf32>
    %90 = vector.shape_cast %82 : vector<8x64xf32> to vector<8x1x64xf32>
    %91 = vector.broadcast %89 : vector<8x16x1xf32> to vector<8x16x64xf32>
    %92 = vector.broadcast %90 : vector<8x1x64xf32> to vector<8x16x64xf32>
    %93 = arith.mulf %91, %92 : vector<8x16x64xf32>
    %94 = tpu.transpose %67, [1, 0] : vector<8x16xf32> -> vector<16x8xf32>
    %cst_33 = arith.constant 0.000000e+00 : f32
    %95 = vector.broadcast %cst_33 : f32 to vector<16x64xf32>
    %96 = vector.extract_strided_slice %88 {offsets = [0, 0, 0], sizes = [1, 16, 64], strides = [1, 1, 1]} : vector<8x16x64xf32> to vector<1x16x64xf32>
    %97 = vector.shape_cast %96 : vector<1x16x64xf32> to vector<16x64xf32>
    %98 = arith.mulf %97, %95 : vector<16x64xf32>
    %99 = vector.extract_strided_slice %93 {offsets = [0, 0, 0], sizes = [1, 16, 64], strides = [1, 1, 1]} : vector<8x16x64xf32> to vector<1x16x64xf32>
    %100 = vector.shape_cast %99 : vector<1x16x64xf32> to vector<16x64xf32>
    %101 = arith.addf %98, %100 : vector<16x64xf32>
    %102 = vector.extract_strided_slice %94 {offsets = [0, 0], sizes = [16, 1], strides = [1, 1]} : vector<16x8xf32> to vector<16x1xf32>
    %103 = vector.broadcast %102 : vector<16x1xf32> to vector<16x64xf32>
    %104 = arith.mulf %101, %103 : vector<16x64xf32>
    %cst_34 = arith.constant dense<0.000000e+00> : vector<64xf32>
    %105 = vector.multi_reduction <add>, %104, %cst_34 [0] : vector<16x64xf32> to vector<64xf32>
    %106 = vector.shape_cast %105 : vector<64xf32> to vector<1x64xf32>
    %107 = vector.extract_strided_slice %88 {offsets = [1, 0, 0], sizes = [1, 16, 64], strides = [1, 1, 1]} : vector<8x16x64xf32> to vector<1x16x64xf32>
    %108 = vector.shape_cast %107 : vector<1x16x64xf32> to vector<16x64xf32>
    %109 = arith.mulf %108, %101 : vector<16x64xf32>
    %110 = vector.extract_strided_slice %93 {offsets = [1, 0, 0], sizes = [1, 16, 64], strides = [1, 1, 1]} : vector<8x16x64xf32> to vector<1x16x64xf32>
    %111 = vector.shape_cast %110 : vector<1x16x64xf32> to vector<16x64xf32>
    %112 = arith.addf %109, %111 : vector<16x64xf32>
    %113 = vector.extract_strided_slice %94 {offsets = [0, 1], sizes = [16, 1], strides = [1, 1]} : vector<16x8xf32> to vector<16x1xf32>
    %114 = vector.broadcast %113 : vector<16x1xf32> to vector<16x64xf32>
    %115 = arith.mulf %112, %114 : vector<16x64xf32>
    %cst_35 = arith.constant dense<0.000000e+00> : vector<64xf32>
    %116 = vector.multi_reduction <add>, %115, %cst_35 [0] : vector<16x64xf32> to vector<64xf32>
    %117 = vector.shape_cast %116 : vector<64xf32> to vector<1x64xf32>
    %118 = vector.extract_strided_slice %88 {offsets = [2, 0, 0], sizes = [1, 16, 64], strides = [1, 1, 1]} : vector<8x16x64xf32> to vector<1x16x64xf32>
    %119 = vector.shape_cast %118 : vector<1x16x64xf32> to vector<16x64xf32>
    %120 = arith.mulf %119, %112 : vector<16x64xf32>
    %121 = vector.extract_strided_slice %93 {offsets = [2, 0, 0], sizes = [1, 16, 64], strides = [1, 1, 1]} : vector<8x16x64xf32> to vector<1x16x64xf32>
    %122 = vector.shape_cast %121 : vector<1x16x64xf32> to vector<16x64xf32>
    %123 = arith.addf %120, %122 : vector<16x64xf32>
    %124 = vector.extract_strided_slice %94 {offsets = [0, 2], sizes = [16, 1], strides = [1, 1]} : vector<16x8xf32> to vector<16x1xf32>
    %125 = vector.broadcast %124 : vector<16x1xf32> to vector<16x64xf32>
    %126 = arith.mulf %123, %125 : vector<16x64xf32>
    %cst_36 = arith.constant dense<0.000000e+00> : vector<64xf32>
    %127 = vector.multi_reduction <add>, %126, %cst_36 [0] : vector<16x64xf32> to vector<64xf32>
    %128 = vector.shape_cast %127 : vector<64xf32> to vector<1x64xf32>
    %129 = vector.extract_strided_slice %88 {offsets = [3, 0, 0], sizes = [1, 16, 64], strides = [1, 1, 1]} : vector<8x16x64xf32> to vector<1x16x64xf32>
    %130 = vector.shape_cast %129 : vector<1x16x64xf32> to vector<16x64xf32>
    %131 = arith.mulf %130, %123 : vector<16x64xf32>
    %132 = vector.extract_strided_slice %93 {offsets = [3, 0, 0], sizes = [1, 16, 64], strides = [1, 1, 1]} : vector<8x16x64xf32> to vector<1x16x64xf32>
    %133 = vector.shape_cast %132 : vector<1x16x64xf32> to vector<16x64xf32>
    %134 = arith.addf %131, %133 : vector<16x64xf32>
    %135 = vector.extract_strided_slice %94 {offsets = [0, 3], sizes = [16, 1], strides = [1, 1]} : vector<16x8xf32> to vector<16x1xf32>
    %136 = vector.broadcast %135 : vector<16x1xf32> to vector<16x64xf32>
    %137 = arith.mulf %134, %136 : vector<16x64xf32>
    %cst_37 = arith.constant dense<0.000000e+00> : vector<64xf32>
    %138 = vector.multi_reduction <add>, %137, %cst_37 [0] : vector<16x64xf32> to vector<64xf32>
    %139 = vector.shape_cast %138 : vector<64xf32> to vector<1x64xf32>
    %140 = vector.extract_strided_slice %88 {offsets = [4, 0, 0], sizes = [1, 16, 64], strides = [1, 1, 1]} : vector<8x16x64xf32> to vector<1x16x64xf32>
    %141 = vector.shape_cast %140 : vector<1x16x64xf32> to vector<16x64xf32>
    %142 = arith.mulf %141, %134 : vector<16x64xf32>
    %143 = vector.extract_strided_slice %93 {offsets = [4, 0, 0], sizes = [1, 16, 64], strides = [1, 1, 1]} : vector<8x16x64xf32> to vector<1x16x64xf32>
    %144 = vector.shape_cast %143 : vector<1x16x64xf32> to vector<16x64xf32>
    %145 = arith.addf %142, %144 : vector<16x64xf32>
    %146 = vector.extract_strided_slice %94 {offsets = [0, 4], sizes = [16, 1], strides = [1, 1]} : vector<16x8xf32> to vector<16x1xf32>
    %147 = vector.broadcast %146 : vector<16x1xf32> to vector<16x64xf32>
    %148 = arith.mulf %145, %147 : vector<16x64xf32>
    %cst_38 = arith.constant dense<0.000000e+00> : vector<64xf32>
    %149 = vector.multi_reduction <add>, %148, %cst_38 [0] : vector<16x64xf32> to vector<64xf32>
    %150 = vector.shape_cast %149 : vector<64xf32> to vector<1x64xf32>
    %151 = vector.extract_strided_slice %88 {offsets = [5, 0, 0], sizes = [1, 16, 64], strides = [1, 1, 1]} : vector<8x16x64xf32> to vector<1x16x64xf32>
    %152 = vector.shape_cast %151 : vector<1x16x64xf32> to vector<16x64xf32>
    %153 = arith.mulf %152, %145 : vector<16x64xf32>
    %154 = vector.extract_strided_slice %93 {offsets = [5, 0, 0], sizes = [1, 16, 64], strides = [1, 1, 1]} : vector<8x16x64xf32> to vector<1x16x64xf32>
    %155 = vector.shape_cast %154 : vector<1x16x64xf32> to vector<16x64xf32>
    %156 = arith.addf %153, %155 : vector<16x64xf32>
    %157 = vector.extract_strided_slice %94 {offsets = [0, 5], sizes = [16, 1], strides = [1, 1]} : vector<16x8xf32> to vector<16x1xf32>
    %158 = vector.broadcast %157 : vector<16x1xf32> to vector<16x64xf32>
    %159 = arith.mulf %156, %158 : vector<16x64xf32>
    %cst_39 = arith.constant dense<0.000000e+00> : vector<64xf32>
    %160 = vector.multi_reduction <add>, %159, %cst_39 [0] : vector<16x64xf32> to vector<64xf32>
    %161 = vector.shape_cast %160 : vector<64xf32> to vector<1x64xf32>
    %162 = vector.extract_strided_slice %88 {offsets = [6, 0, 0], sizes = [1, 16, 64], strides = [1, 1, 1]} : vector<8x16x64xf32> to vector<1x16x64xf32>
    %163 = vector.shape_cast %162 : vector<1x16x64xf32> to vector<16x64xf32>
    %164 = arith.mulf %163, %156 : vector<16x64xf32>
    %165 = vector.extract_strided_slice %93 {offsets = [6, 0, 0], sizes = [1, 16, 64], strides = [1, 1, 1]} : vector<8x16x64xf32> to vector<1x16x64xf32>
    %166 = vector.shape_cast %165 : vector<1x16x64xf32> to vector<16x64xf32>
    %167 = arith.addf %164, %166 : vector<16x64xf32>
    %168 = vector.extract_strided_slice %94 {offsets = [0, 6], sizes = [16, 1], strides = [1, 1]} : vector<16x8xf32> to vector<16x1xf32>
    %169 = vector.broadcast %168 : vector<16x1xf32> to vector<16x64xf32>
    %170 = arith.mulf %167, %169 : vector<16x64xf32>
    %cst_40 = arith.constant dense<0.000000e+00> : vector<64xf32>
    %171 = vector.multi_reduction <add>, %170, %cst_40 [0] : vector<16x64xf32> to vector<64xf32>
    %172 = vector.shape_cast %171 : vector<64xf32> to vector<1x64xf32>
    %173 = vector.extract_strided_slice %88 {offsets = [7, 0, 0], sizes = [1, 16, 64], strides = [1, 1, 1]} : vector<8x16x64xf32> to vector<1x16x64xf32>
    %174 = vector.shape_cast %173 : vector<1x16x64xf32> to vector<16x64xf32>
    %175 = arith.mulf %174, %167 : vector<16x64xf32>
    %176 = vector.extract_strided_slice %93 {offsets = [7, 0, 0], sizes = [1, 16, 64], strides = [1, 1, 1]} : vector<8x16x64xf32> to vector<1x16x64xf32>
    %177 = vector.shape_cast %176 : vector<1x16x64xf32> to vector<16x64xf32>
    %178 = arith.addf %175, %177 : vector<16x64xf32>
    %179 = vector.extract_strided_slice %94 {offsets = [0, 7], sizes = [16, 1], strides = [1, 1]} : vector<16x8xf32> to vector<16x1xf32>
    %180 = vector.broadcast %179 : vector<16x1xf32> to vector<16x64xf32>
    %181 = arith.mulf %178, %180 : vector<16x64xf32>
    %cst_41 = arith.constant dense<0.000000e+00> : vector<64xf32>
    %182 = vector.multi_reduction <add>, %181, %cst_41 [0] : vector<16x64xf32> to vector<64xf32>
    %183 = vector.shape_cast %182 : vector<64xf32> to vector<1x64xf32>
    %184 = tpu.concatenate %106, %117, %128, %139, %150, %161, %172, %183 in 0 : vector<1x64xf32>, vector<1x64xf32>, vector<1x64xf32>, vector<1x64xf32>, vector<1x64xf32>, vector<1x64xf32>, vector<1x64xf32>, vector<1x64xf32> -> vector<8x64xf32>
    %c0_42 = arith.constant 0 : index
    %c0_43 = arith.constant 0 : index
    %185 = vector.load %arg11[%c0_42, %c0_43] : memref<1x64xf32, #tpu.memory_space<vmem>>, vector<1x64xf32>
    %186 = vector.broadcast %185 : vector<1x64xf32> to vector<8x64xf32>
    %187 = arith.mulf %61, %186 : vector<8x64xf32>
    %188 = arith.addf %184, %187 : vector<8x64xf32>
    %cst_44 = arith.constant 0.000000e+00 : f32
    %189 = vector.broadcast %cst_44 : f32 to vector<8x64xf32>
    %190 = arith.subf %189, %30 : vector<8x64xf32>
    %191 = math.exp %190 : vector<8x64xf32>
    %cst_45 = arith.constant 1.000000e+00 : f32
    %192 = vector.broadcast %cst_45 : f32 to vector<8x64xf32>
    %193 = arith.addf %192, %191 : vector<8x64xf32>
    %194 = tpu.reciprocal %193 {approx = true} : vector<8x64xf32> -> vector<8x64xf32>
    %195 = arith.mulf %30, %194 : vector<8x64xf32>
    %196 = arith.mulf %188, %195 : vector<8x64xf32>
    %197 = arith.truncf %196 : vector<8x64xf32> to vector<8x64xbf16>
    %c0_46 = arith.constant 0 : index
    %c0_47 = arith.constant 0 : index
    %198 = vector.load %arg12[%c0_46, %c0_47] : memref<64x32xbf16, #tpu.memory_space<vmem>>, vector<64x32xbf16>
    %cst_48 = arith.constant dense<0.000000e+00> : vector<8x32xf32>
    %199 = tpu.matmul %197, %198, %cst_48 {dimension_numbers = #tpu.dot_dimension_numbers<[1], [0], [0], [1], [0, 0, 1, 1], [], []>} : vector<8x64xbf16>, vector<64x32xbf16>, vector<8x32xf32> -> vector<8x32xf32>
    %c0_49 = arith.constant 0 : index
    %c0_50 = arith.constant 0 : index
    %200 = vector.load %arg13[%c0_49, %c0_50] : memref<8x32xf32, #tpu.memory_space<vmem>>, vector<8x32xf32>
    tpu.vector_store %arg13[%c0_49, %c0_50], %199 {strides = array<i32>} : memref<8x32xf32, #tpu.memory_space<vmem>>, vector<8x32xf32>,
    return
  }
  func.func @transform_0(%arg0: i32) -> (i32, i32) {
    %c0_i32 = arith.constant 0 : i32
    %c0_i32_0 = arith.constant 0 : i32
    return %arg0, %c0_i32 : i32, i32
  }
  func.func @transform_1(%arg0: i32) -> (i32, i32) {
    %c0_i32 = arith.constant 0 : i32
    %c0_i32_0 = arith.constant 0 : i32
    return %arg0, %c0_i32 : i32, i32
  }
  func.func @transform_2(%arg0: i32) -> (i32, i32) {
    %c0_i32 = arith.constant 0 : i32
    %c0_i32_0 = arith.constant 0 : i32
    %c0_i32_1 = arith.constant 0 : i32
    return %c0_i32, %c0_i32_0 : i32, i32
  }
  func.func @transform_3(%arg0: i32) -> (i32, i32) {
    %c0_i32 = arith.constant 0 : i32
    %c0_i32_0 = arith.constant 0 : i32
    %c0_i32_1 = arith.constant 0 : i32
    return %c0_i32, %c0_i32_0 : i32, i32
  }
  func.func @transform_4(%arg0: i32) -> (i32, i32) {
    %c0_i32 = arith.constant 0 : i32
    %c0_i32_0 = arith.constant 0 : i32
    %c0_i32_1 = arith.constant 0 : i32
    return %c0_i32, %c0_i32_0 : i32, i32
  }
  func.func @transform_5(%arg0: i32) -> (i32, i32) {
    %c0_i32 = arith.constant 0 : i32
    %c0_i32_0 = arith.constant 0 : i32
    %c0_i32_1 = arith.constant 0 : i32
    return %c0_i32, %c0_i32_0 : i32, i32
  }
  func.func @transform_6(%arg0: i32) -> (i32, i32) {
    %c0_i32 = arith.constant 0 : i32
    %c0_i32_0 = arith.constant 0 : i32
    %c0_i32_1 = arith.constant 0 : i32
    return %c0_i32, %c0_i32_0 : i32, i32
  }
  func.func @transform_7(%arg0: i32) -> (i32, i32) {
    %c0_i32 = arith.constant 0 : i32
    %c0_i32_0 = arith.constant 0 : i32
    %c0_i32_1 = arith.constant 0 : i32
    return %c0_i32, %c0_i32_0 : i32, i32
  }
  func.func @transform_8(%arg0: i32) -> (i32, i32) {
    %c0_i32 = arith.constant 0 : i32
    %c0_i32_0 = arith.constant 0 : i32
    %c0_i32_1 = arith.constant 0 : i32
    return %c0_i32, %c0_i32_0 : i32, i32
  }
  func.func @transform_9(%arg0: i32) -> (i32, i32) {
    %c0_i32 = arith.constant 0 : i32
    %c0_i32_0 = arith.constant 0 : i32
    %c0_i32_1 = arith.constant 0 : i32
    return %c0_i32, %c0_i32_0 : i32, i32
  }
  func.func @transform_10(%arg0: i32) -> (i32, i32) {
    %c0_i32 = arith.constant 0 : i32
    %c0_i32_0 = arith.constant 0 : i32
    %c0_i32_1 = arith.constant 0 : i32
    return %c0_i32, %c0_i32_0 : i32, i32
  }
  func.func @transform_11(%arg0: i32) -> (i32, i32) {
    %c0_i32 = arith.constant 0 : i32
    %c0_i32_0 = arith.constant 0 : i32
    %c0_i32_1 = arith.constant 0 : i32
    return %c0_i32, %c0_i32_0 : i32, i32
  }
  func.func @transform_12(%arg0: i32) -> (i32, i32) {
    %c0_i32 = arith.constant 0 : i32
    %c0_i32_0 = arith.constant 0 : i32
    return %arg0, %c0_i32 : i32, i32
  }
  func.func @transform_13(%arg0: i32) -> (i32, i32) {
    %c0_i32 = arith.constant 0 : i32
    %c0_i32_0 = arith.constant 0 : i32
    return %arg0, %c0_i32 : i32, i32
  }
}

</mosaic_0001>

<bundles_post_ra>
// kernel: tpu_custom_call.1
= control target key start
LH: loop header
LB: loop body
LE: loop exit
PB: predicated region body
PF: predicated region fallthrough
CT: control target
= control target key end

     0   :  { %s2873_s0 = inlined_call_operand.vmem [shape: f32[16,32], index: 0, kind: input, shape index: {}]   ;;  %s2874_s1 = inlined_call_operand.hbm [shape: f32[16,32], index: 1, kind: input, shape index: {}]   ;;  %s2875_s2 = inlined_call_operand.vmem [shape: f32[1,32], index: 2, kind: input, shape index: {}]   ;;  %s2876_s3 = inlined_call_operand.vmem [shape: f32[1,32], index: 3, kind: input, shape index: {}]   ;;  %s2877_s4 = inlined_call_operand.hbm [shape: bf16[32,128], index: 4, kind: input, shape index: {}]   ;;  %s2878_s5 = inlined_call_operand.hbm [shape: f32[4,64], index: 5, kind: input, shape index: {}]   ;;  %s2879_s6 = inlined_call_operand.hbm [shape: f32[1,64], index: 6, kind: input, shape index: {}]   ;;  %s2880_s7 = inlined_call_operand.vmem [shape: bf16[64,96], index: 7, kind: input, shape index: {}]   ;;  %s2881_s8 = inlined_call_operand.hbm [shape: f32[1,64], index: 8, kind: input, shape index: {}]   ;;  %s2882_s9 = inlined_call_operand.vmem [shape: f32[16,64], index: 9, kind: input, shape index: {}]   ;;  %s2883_s10 = inlined_call_operand.vmem [shape: f32[1,64], index: 10, kind: input, shape index: {}]   ;;  %s2884_s11 = inlined_call_operand.vmem [shape: bf16[64,32], index: 11, kind: input, shape index: {}]   ;;  %s2885_s12 = inlined_call_operand.hbm [shape: f32[16,32], index: 12, kind: output, shape index: {0}]   ;;  %s2886_s13 = inlined_call_operand.hbm [shape: f32[16,32], index: 13, kind: output, shape index: {1}]  }
   0x1   :  { %2895 = sst [smem:[#allocation19_spill]] %s2873_s0 }
   0x2   :  { %2896 = sst [smem:[#allocation20_spill]] %s2874_s1 }
   0x3   :  { %2897 = sst [smem:[#allocation21_spill]] %s2877_s4 }
   0x4   :  { %2898 = sst [smem:[#allocation22_spill]] %s2882_s9 }
   0x5   :  { %2899 = sst [smem:[#allocation23_spill]] %s2883_s10 }
   0x6   :  { %2900 = sst [smem:[#allocation24_spill]] %s2884_s11 }
   0x7   :  { %2901 = sst [smem:[#allocation25_spill]] %s2885_s12 }
   0x8   :  { %2902 = sst [smem:[#allocation26_spill]] %s2886_s13 }
   0x9   :  { %19 = vsyncpa [#allocation3], 0 }
   0xa   :  { %21 = vsyncpa [#allocation3 + $0x1], 0 }
   0xb   :  { %22 = vsyncpa [#allocation6], 0 }
   0xc   :  { %23 = vsyncpa [#allocation9], 0 }
   0xd   :  { %24 = vsyncpa [#allocation4], 0 }
   0xe   :  { %26 = vsyncpa [#allocation4 + $0x1], 0 }
   0xf   :  { %27 = vsyncpa [#allocation13], 0 }
  0x10   :  { %29 = vsyncpa [#allocation13 + $0x1], 0  ;;  %s2251_s25 = smov 0   ;;  %s2253_s26 = smov 0  }
  0x11   :  { %s2255_s27 = smov 0   ;;  %s2257_s28 = smov 0  }
  0x12 LB: > { %s2159_s29 = smov [#allocation5]   ;;  %s2272_s14 = sadd.s32 4294967295, %s2157_s28   ;;  %s2157_s28 = sphi %s2257_s28, %s2932_s28   ;;  %s2153_s27 = sphi %s2255_s27, %s2931_s27   ;;  %s2149_s26 = sphi %s2253_s26, %s2930_s26   ;;  %s2145_s25 = sphi %s2251_s25, %s2929_s25  }
  0x13   : > { %s372_s30 = sshll.u32 %s2159_s29, 4  ;;  %p1643_p0 = scmp.ge.s32.totalorder %s2157_s28, 1  ;;  %s2277_s30 = int_to_ptr.vmem [resolvable:$true] %s372_s30 }
  0x14   : > { %p2891_p1 = scmp.eq.s32.totalorder %s2272_s14, 0  ;;  %p354_p2 = scmp.lt.s32.totalorder %s2157_s28, 3 }
  0x15   : > { %s2160_s16 = smov [#allocation8]   ;;  %s2161_s19 = smov [#allocation7]  }
  0x16   : > { %p2279_p3 = pnand %p1643_p0, %p354_p2  ;;  %s397_s17 = sshll.u32 %s2160_s16, 4  ;;  %s2292_s17 = int_to_ptr.vmem [resolvable:$true] %s397_s17 }
  0x17   : > { %s386_s20 = sshll.u32 %s2161_s19, 4  ;;  %s2905_s4 = sld [smem:[#allocation21_spill]]  ;;  %s2294_s20 = int_to_ptr.vmem [resolvable:$true] %s386_s20 }
  0x18   : > { %s2903_s15 = scalar_select %p2279_p3, 1, 0 }
  0x19   : > { %p1751_p5 = pneg %p2279_p3 }
  0x1b   : > { %p2288_p6 = pnand %p1751_p5, %p2891_p1 }
  0x1d   : > { %s1909_s23 = scalar_lea.hbm %s2905_s4, 256  ;;  %p2304_p8 = pneg %p2288_p6 }
  0x1e   : > { %p1910_p7 = scmp.ne.s32.totalorder %s2905_s4, %s1909_s23  ;;  %p1916_p11 = scmp.lt.u32.totalorder %s1909_s23, %s2905_s4 }
  0x20   : > { %p1912_p9 = pnand %p2304_p8, %p1910_p7 }
  0x22   : > { %p1913_p10 = pneg %p1912_p9 }
  0x24   : > { %p1918_p12 = pnand %p1916_p11, %p1913_p10 }
  0x26   : > { %1921 = shalt.err (!%p1918_p12)
}
  0x27   : > { %s1922_s21 = scalar_lea.vmem %s2277_s30, 256  ;;  %p1930_p5 = scmp.lt.s32.totalorder %s2277_s30, %s2277_s30 }
  0x28   : > { %p1923_p13 = scmp.ne.s32.totalorder %s2277_s30, %s1922_s21  ;;  %p1931_p4 = scmp.lt.s32.totalorder %s1922_s21, %s1922_s21 }
  0x2a   : > { %p1925_p0 = pnand %p1923_p13, %p2304_p8  ;;  %p1932_p7 = por %p1931_p4, %p1930_p5 }
  0x2c   : > { %p1926_p2 = pneg %p1925_p0 }
  0x2e   : > { %p1933_p9 = pnand %p1932_p7, %p1926_p2 }
  0x30   : > { %1936 = shalt.err (!%p1933_p9)
}
  0x31   : > { %s2162_s22 = smov 64   ;;  %s2163_s12 = smov 4  }
  0x32   : > { %1754 = dma.hbm_to_vmem [thread:$0]  (!%p2288_p6), %s2905_s4, 256, %s2277_s30, [#allocation6], %s2162_s22, %s2162_s22, %s2163_s12  }
  0x33   : > { %s1937_s13 = scalar_lea.hbm %s2879_s6, 16 }
  0x34   : > { %p1938_p4 = scmp.ne.s32.totalorder %s2879_s6, %s1937_s13  ;;  %p1944_p12 = scmp.lt.u32.totalorder %s1937_s13, %s2879_s6 }
  0x36   : > { %p1940_p10 = pnand %p1938_p4, %p2304_p8 }
  0x38   : > { %p1941_p11 = pneg %p1940_p10 }
  0x3a   : > { %p1946_p13 = pnand %p1944_p12, %p1941_p11 }
  0x3c   : > { %1949 = shalt.err (!%p1946_p13)
}
  0x3d   : > { %s1950_s30 = scalar_lea.vmem %s2292_s17, 16  ;;  %s1957_s10 = scalar_lea.vmem %s2292_s17, 32 }
  0x3e   : > { %p1951_p0 = scmp.ne.s32.totalorder %s2292_s17, %s1950_s30  ;;  %p1958_p7 = scmp.lt.s32.totalorder %s2292_s17, %s2292_s17 }
  0x3f   : > { %p1959_p9 = scmp.lt.s32.totalorder %s1957_s10, %s1950_s30 }
  0x40   : > { %p1953_p2 = pnand %p1951_p0, %p2304_p8 }
  0x41   : > { %p1960_p4 = por %p1959_p9, %p1958_p7 }
  0x42   : > { %p1954_p5 = pneg %p1953_p2 }
  0x44   : > { %p1961_p10 = pnand %p1960_p4, %p1954_p5 }
  0x46   : > { %1964 = shalt.err (!%p1961_p10)
}
  0x47   : > { %1760 = dma.hbm_to_vmem [thread:$0]  (!%p2288_p6), %s2879_s6, 16, %s2292_s17, [#allocation9]  }
  0x48   : > { %s1965_s12 = scalar_lea.hbm %s2878_s5, 64 }
  0x49   : > { %p1966_p11 = scmp.ne.s32.totalorder %s2878_s5, %s1965_s12  ;;  %p1972_p0 = scmp.lt.u32.totalorder %s1965_s12, %s2878_s5 }
  0x4b   : > { %p1968_p12 = pnand %p1966_p11, %p2304_p8 }
  0x4d   : > { %p1969_p13 = pneg %p1968_p12 }
  0x4f   : > { %p1974_p2 = pnand %p1972_p0, %p1969_p13 }
  0x51   : > { %1977 = shalt.err (!%p1974_p2)
}
  0x52   : > { %s1978_s17 = scalar_lea.vmem %s2294_s20, 64  ;;  %p1986_p4 = scmp.lt.s32.totalorder %s2294_s20, %s2294_s20 }
  0x53   : > { %p1979_p5 = scmp.ne.s32.totalorder %s2294_s20, %s1978_s17  ;;  %p1987_p10 = scmp.lt.s32.totalorder %s1978_s17, %s1978_s17 }
  0x55   : > { %p1981_p7 = pnand %p1979_p5, %p2304_p8  ;;  %p1988_p11 = por %p1987_p10, %p1986_p4 }
  0x57   : > { %p1982_p9 = pneg %p1981_p7 }
  0x59   : > { %p1989_p12 = pnand %p1988_p11, %p1982_p9 }
  0x5b   : > { %1992 = shalt.err (!%p1989_p12)
}
  0x5c   : > { %1757 = dma.hbm_to_vmem [thread:$0]  (!%p2288_p6), %s2878_s5, 64, %s2294_s20, [#allocation6]  }
  0x5d   : > { %s2164_s10 = smov [#allocation10]   ;;  %s1993_s22 = scalar_lea.hbm %s2881_s8, 16 }
  0x5e   : > { %s411_s9 = sshll.u32 %s2164_s10, 4  ;;  %p1994_p13 = scmp.ne.s32.totalorder %s2881_s8, %s1993_s22  ;;  %s412_s9 = int_to_ptr.vmem [resolvable:$true] %s411_s9 }
  0x5f   : > { %p2000_p5 = scmp.lt.u32.totalorder %s1993_s22, %s2881_s8 }
  0x60   : > { %p1996_p0 = pnand %p1994_p13, %p2304_p8 }
  0x62   : > { %p1997_p2 = pneg %p1996_p0 }
  0x64   : > { %p2002_p7 = pnand %p2000_p5, %p1997_p2 }
  0x66   : > { %2005 = shalt.err (!%p2002_p7)
}
  0x67   : > { %s2006_s20 = scalar_lea.vmem %s412_s9, 16  ;;  %s2013_s19 = scalar_lea.vmem %s412_s9, 32 }
  0x68   : > { %p2007_p9 = scmp.ne.s32.totalorder %s412_s9, %s2006_s20  ;;  %p2014_p11 = scmp.lt.s32.totalorder %s412_s9, %s412_s9 }
  0x69   : > { %p2015_p12 = scmp.lt.s32.totalorder %s2013_s19, %s2006_s20 }
  0x6a   : > { %p2009_p4 = pnand %p2007_p9, %p2304_p8 }
  0x6b   : > { %p2016_p1 = por %p2015_p12, %p2014_p11 }
  0x6c   : > { %p2010_p10 = pneg %p2009_p4 }
  0x6e   : > { %p2017_p3 = pnand %p2016_p1, %p2010_p10 }
  0x70   : > { %2020 = shalt.err (!%p2017_p3)
}
  0x71   : > { %1763 = dma.hbm_to_vmem [thread:$0]  (!%p2288_p6), %s2881_s8, 16, %s412_s9, [#allocation9]  }
  0x72   : > { %s1642_s16 = sadd.s32 4294967294, %s2157_s28   ;;  %s2392_s18 = sadd.s32 1, %s2157_s28  }
  0x73   : > { %s65_s30 = ssub.s32 %s2157_s28, %s2392_s18  ;;  %s68_s10 = sadd.s32 1, %s2153_s27 }
  0x74   : > { %p66_p1 = scmp.eq.s32.totalorder %s65_s30, 0  ;;  %p75_p3 = scmp.ne.s32.totalorder %s2153_s27, %s2149_s26 }
  0x75   : > { %p76_p8 = scmp.eq.s32.totalorder %s2157_s28, 0  ;;  %p81_p13 = scmp.ne.s32.totalorder %s2149_s26, %s2145_s25 }
  0x76   : > { %s2403_s11 = scalar_select %p66_p1, %s2153_s27, %s68_s10  }
  0x77   : > { %p2405_p0 = por %p76_p8, %p75_p3  ;;  %p2908_p2 = scmp.eq.s32.totalorder %s2272_s14, 0 }
  0x78   : > { %p315_p5 = scmp.eq.s32.totalorder %s2272_s14, 1  ;;  %p321_p7 = scmp.eq.s32.totalorder %s1642_s16, 1 }
  0x79   : > { %p2411_p6 = por %p2908_p2, %p81_p13  ;;  %p1779_p9 = scmp.lt.s32.totalorder %s2157_s28, 2 }
  0x7a   : > { %s438_s22 = sand.u32 1, %s2153_s27   ;;  %p2418_p4 = por %p315_p5, %p75_p3 }
  0x7b   : > { %p2422_p10 = por %p321_p7, %p81_p13  ;;  %s1649_s24 = sshll.u32 %s438_s22, 3 }
  0x7c   : > { %s2910_s12 = scalar_select %p2418_p4, 1, 0 }
  0x7d   : > { %s2911_s23 = scalar_select %p2422_p10, 1, 0 }
  0x7e   : > { %s1650_s29 = sshll.u32 %s2157_s28, 7  ;;  %s2912_s1 = sld [smem:[#allocation20_spill]] }
  0x7f   : > { %s442_s21 = scalar_lea.vmem [#allocation2], %s1649_s24  ;;  %p2436_p11 = pnand %p1779_p9, %p2405_p0 }
  0x80   : > { %s449_s16 = sshll.u32 %s442_s21, 4  ;;  %s439_s10 = scalar_lea.sflag [#allocation3], %s438_s22  ;;  %s2432_s16 = int_to_ptr.vmem [resolvable:$true] %s449_s16 }
  0x81   : > { %p2023_p1 = pneg %p2436_p11 }
  0x84   : > { %s2430_s17 = scalar_lea.hbm %s2912_s1, %s1650_s29  ;;  %s2026_s20 = scalar_lea.hbm %s2912_s1, 256 }
  0x85   : > { %s2021_s4 = scalar_lea.hbm %s2430_s17, 128  ;;  %p2027_p13 = scmp.lt.u32.totalorder %s2430_s17, %s2912_s1 }
  0x86   : > { %p2022_p12 = scmp.ne.s32.totalorder %s2430_s17, %s2021_s4  ;;  %p2028_p0 = scmp.lt.u32.totalorder %s2026_s20, %s2021_s4 }
  0x87   : > { %p2030_p5 = scmp.lt.u32.totalorder %s2021_s4, %s2430_s17 }
  0x88   : > { %p2024_p3 = pnand %p2023_p1, %p2022_p12  ;;  %p2029_p2 = por %p2028_p0, %p2027_p13 }
  0x8a   : > { %p2025_p8 = pneg %p2024_p3  ;;  %p2031_p7 = por %p2030_p5, %p2029_p2 }
  0x8c   : > { %p2032_p9 = pnand %p2031_p7, %p2025_p8 }
  0x8e   : > { %2035 = shalt.err (!%p2032_p9)
}
  0x8f   : > { %s2036_s22 = scalar_lea.vmem %s2432_s16, 128  ;;  %s2165_s21 = smov [#allocation2]  }
  0x90   : > { %p2037_p12 = scmp.ne.s32.totalorder %s2432_s16, %s2036_s22  ;;  %s2041_s24 = sshll.u32 %s2165_s21, 4  ;;  %s2042_s24 = int_to_ptr.vmem [resolvable:$false] %s2041_s24 }
  0x91   : > { %s2043_s29 = scalar_lea.vmem %s2042_s24, 256  ;;  %p2044_p4 = scmp.lt.s32.totalorder %s2432_s16, %s2042_s24 }
  0x92   : > { %p2039_p3 = pnand %p2037_p12, %p2023_p1  ;;  %p2045_p13 = scmp.lt.s32.totalorder %s2043_s29, %s2036_s22 }
  0x94   : > { %p2040_p10 = pneg %p2039_p3  ;;  %p2046_p0 = por %p2045_p13, %p2044_p4 }
  0x96   : > { %p2047_p2 = pnand %p2046_p0, %p2040_p10 }
  0x98   : > { %2050 = shalt.err (!%p2047_p2)
}
  0x99   : > { %1767 = dma.hbm_to_vmem [thread:$0]  (!%p2436_p11), %s2430_s17, 128, %s2432_s16, %s439_s10  }
  0x9a   : > { %p2914_p8 = scmp.ne.s32.totalorder %s2903_s15, 0 }
  0x9b   : > { %s2468_s4 = sand.u32 (!%p2914_p8), 1, %s2149_s26  }
  0x9c   : > { %458 = sbr.rel (%p2914_p8) target bundleno = 1634 (0x662), region = 68  ;;  %s2471_s20 = sshll.u32 (!%p2914_p8), %s2468_s4, 3 }
  0x9d   : > { %s461_s13 = scalar_lea.sflag (!%p2914_p8), [#allocation3], %s2468_s4  ;;  %s464_s19 = scalar_lea.vmem (!%p2914_p8), [#allocation2], %s2471_s20 }
  0xa3   : > { %2124 = dma.done.wait (%p2411_p6), %s461_s13, 128  }
  0xa4   : > { %2126 = vsyncadd (%p2411_p6), %s461_s13, 4294967168  ;;  %p2915_p4 = scmp.eq.s32.totalorder %s2272_s14, 0 }
  0xa6   : > { %2128 = dma.done.wait (%p2915_p4), [#allocation6], 320   ;;  %p2916_p10 = pmov %p2915_p4 }
  0xa7   : > { %p2917_p11 = pmov %p2915_p4 }
  0xa8   : > { %2130 = vsyncadd (%p2916_p10), [#allocation6], 4294966976 }
  0xa9   : > { %2132 = dma.done.wait (%p2917_p11), [#allocation9], 32   ;;  %p2918_p1 = pmov %p2915_p4 }
  0xaa   : > { %p532_p5 = scmp.lt.s32.totalorder %s2272_s14, 1  ;;  %s2919_s0 = sld [smem:[#allocation19_spill]]  ;;  %v538_v1 = vld [vmem:[%s464_s19] sm:$0xff]  ;;  %vm540_vm0 = vcmask 261120   ;;  %v1853_v9 = vld [vmem:[#allocation5] sm:$0xff]   ;;  %v2166_v10 = vmov 0.0   ;;  %v639_v26 = vlaneseq }
  0xab   : > { %2134 = vsyncadd (%p2918_p1), [#allocation9], 4294967264  ;;  %1697 = vmatprep.subr.bf16.mxu0 %v2166_v10  ;;  %vm2167_vm1 = vmmov 0   ;;  %v1854_v11 = vld [vmem:[#allocation5 + $0x8] sm:$0xff]   ;;  %1705 = vmatprep.subr.bf16.mxu1 %v2166_v10  ;;  %v1660_v16 = vld [vmem:[%s2875_s2] ss:$0 sm:$0xff] }
  0xac   : > { %s533_s15 = scalar_select %p532_p5, %s2272_s14, 1  ;;  %1701 = vmatprep.mubr.msk.bf16.mxu0 %vm2167_vm1, %v2166_v10  ;;  %1698 = vmatpush3.bf16.msra.mxu0 %v1853_v9  ;;  %v1661_v18 = vld [vmem:[%s2876_s3] ss:$0 sm:$0xff]  ;;  %v1856_v23 = vld [vmem:[%s2880_s7 + $0x8] sm:$0xff]   ;;  %v1857_v24 = vld [vmem:[%s2880_s7 + $0x10] sm:$0xff]   ;;  %v2530_v27 = vshrl.u32 %v639_v26, 7 }
  0xad   : > { %1699 = vmatprep.subr.bf16.mxu0 %v2166_v10  ;;  %1713 = vmatprep.mubr.msk.bf16.mxu1 %vm2167_vm1, %v2166_v10  ;;  %v1855_v22 = vld [vmem:[%s2880_s7] sm:$0xff]   ;;  %v1858_v25 = vld [vmem:[%s2880_s7 + $0x18] sm:$0xff]   ;;  %vm636_vm2 = vcmask 1042432   ;;  %vm665_vm3 = vcmask 1046528   ;;  %vm679_vm4 = vcmask 1045504   ;;  %vm724_vm5 = vcmask 523264  }
  0xae   : > { %s1659_s17 = sshll.u32 %s533_s15, 3  ;;  %1706 = vmatpush3.bf16.msra.mxu1 %v1855_v22  ;;  %v641_v28 = vsub.s32 3, %v2530_v27  ;;  %v632_v29 = vld [vmem:[#allocation7] sm:$0xf]  ;;  %v659_v30 = vsub.s32 1, %v2530_v27  ;;  %v673_v31 = vsub.s32 2, %v2530_v27 }
  0xaf   : > { %1707 = vmatprep.subr.bf16.mxu1 %v2166_v10  ;;  %v2536_v32 = vsub.s32 0, %v2530_v27  ;;  %v1665_v37 = vld [vmem:[#allocation8] ss:$0 sm:$0xff]  ;;  %s2168_s10 = smov 48   ;;  %s2920_s24 = sld [smem:[#allocation22_spill]]  ;;  %vm1350_vm6 = vcmask 1040384  }
  0xb0   : > { %s535_s30 = scalar_lea.vmem %s2919_s0, %s1659_s17  ;;  %1700 = vmatpush3.bf16.msra.mxu0 %v1854_v11  ;;  %v642_v33 = vrot.slane %v632_v29, %v641_v28  ;;  %v660_v34 = vrot.slane %v632_v29, %v659_v30  ;;  %v674_v35 = vrot.slane %v632_v29, %v673_v31  ;;  %v988_v11 = vsub.s32 5, %v2530_v27  ;;  %s2178_s29 = smov 64  }
  0xb1   : > { %v537_v0 = vld [vmem:[%s535_s30] sm:$0xff]  ;;  %1717 = vmatprep.subr.bf16.mxu0 %v2166_v10  ;;  %v654_v38 = vrot.slane %v632_v29, %v2536_v32  ;;  %s2921_s15 = sld [smem:[#allocation24_spill]]  ;;  %vm1352_vm7 = vcmask 1041408   ;;  %vm1355_vm8 = vcmask 1043456   ;;  %vm1357_vm9 = vcmask 1044480   ;;  %s2922_s17 = sld [smem:[#allocation23_spill]] }
  0xb2   : > { %v2492_v2 = vadd.f32 %v538_v1, %v537_v0  ;;  %1708 = vmatpush3.bf16.msra.mxu1 %v1856_v23  ;;  %s2894_s16 = sshll.u32 %s2272_s14, 7  ;;  %s531_s9 = scalar_lea.vmem [#allocation12], %s2471_s20 }
  0xb3   : > { %1709 = vmatprep.subr.bf16.mxu1 %v2166_v10  ;;  %s2923_s22 = sld [smem:[#allocation26_spill]]  ;;  %s1464_s13 = scalar_lea.sflag [#allocation13], %s2468_s4 }
  0xb4   : > { %v542_v3 = vsel %vm540_vm0, %v2492_v2, 0.0  ;;  %541 = vst.msk [vmem:[%s531_s9] sm:$0xff] %vm540_vm0, %v2492_v2  ;;  %p2924_p7 = scmp.ne.s32.totalorder %s2910_s12, 0 }
  0xb5   : > { %543 = vadd.xlane.f32.xlu0 %v542_v3 }
  0xb6   : > { %1710 = vmatpush3.bf16.msra.mxu1 %v1857_v24 }
  0xb7   : > { %1711 = vmatprep.subr.bf16.mxu1 %v2166_v10 }
  0xb9   : > { %s2802_s21 = scalar_lea.hbm %s2923_s22, %s2894_s16 }
  0xba   : > { %1712 = vmatpush3.bf16.msra.mxu1 %v1858_v25 }
 0x142   : > { %v544_v4 = vpop.xlane.xlu0 %543 }
 0x143   : > { %v546_v5 = vmul.f32 0.03125, %v544_v4 }
 0x145   : > { %v547_v6 = vsub.f32 %v2492_v2, %v546_v5 }
 0x147   : > { %v548_v7 = vmul.f32 %v547_v6, %v547_v6 }
 0x149   : > { %v549_v8 = vsel %vm540_vm0, %v548_v7, 0.0 }
 0x14a   : > { %550 = vadd.xlane.f32.xlu0 %v549_v8 }
 0x1d7   : > { %v551_v12 = vpop.xlane.xlu0 %550 }
 0x1d8   : > { %v552_v13 = vmul.f32 0.03125, %v551_v12 }
 0x1da   : > { %v553_v14 = vadd.f32 1e-05, %v552_v13  ;;  %v1000_v13 = vsub.s32 6, %v2530_v27 }
 0x1dc   : > { %1863 = vrsqrt.f32 %v553_v14 }
 0x1e6   : > { %v1864_v15 = vpop.eup %1863 }
 0x1e7   : > { %v555_v17 = vmul.f32 %v1864_v15, %v547_v6 }
 0x1e9   : > { %v563_v19 = vmul.f32 %v1660_v16, %v555_v17  ;;  %v976_v17 = vsub.s32 4, %v2530_v27 }
 0x1eb   : > { %v571_v20 = vadd.f32 %v1661_v18, %v563_v19  ;;  %v2169_v19 = vmov 0  }
 0x1ec   : > { %1836 = vset.pattern.permute.xlu0 %v2169_v19 }
 0x1ed   : > { %v572_v21 = vpack.c.bf16 %v571_v20, %v571_v20  ;;  %v1671_v20 = vld [vmem:[#allocation10] ss:$0 sm:$0xff] }
 0x1ef   : > { %1702 = vmatmul.mubr.msk.bf16.vlgmr.msra.gmra.mrb[0].mxu0 %vm540_vm0, %v572_v21 }
 0x1f0   : > { %1725 = vmatprep.mubr.msk.bf16.mxu0 %vm2167_vm1, %v2166_v10 }
 0x2c2   : > { %v2540_v36 = vpop.f32.mrb[0].mxu0 }
 0x2c3   : > { %v634_v39 = vrot.slane %v2540_v36, 5  ;;  %v643_v40 = vmul.f32 %v642_v33, %v2540_v36  ;;  %v1703_v41 = vpop.f32.mrb[1].mxu0 }
 0x2c4   : > { %v629_v42 = vpop.f32.mrb[2].mxu0 }
 0x2c5   : > { %v637_v43 = vsel %vm636_vm2, 0.0, %v634_v39  ;;  %v650_v44 = vadd.f32 %v1665_v37, %v643_v40  ;;  %v662_v45 = vmul.f32 %v660_v34, %v634_v39  ;;  %v676_v46 = vmul.f32 %v674_v35, %v634_v39  ;;  %v1704_v47 = vpop.f32.mrb[3].mxu0  ;;  %v2582_v42 = vld [vmem:[%s2920_s24 + $0x8] sm:$0xff] }
 0x2c6   : > { %v655_v48 = vmul.f32 %v654_v38, %v637_v43  ;;  %v661_v49 = vmul.f32 %v660_v34, %v637_v43  ;;  %v675_v50 = vmul.f32 %v674_v35, %v637_v43 }
 0x2c7   : > { %v667_v51 = vrot.slane %v662_v45, 1  ;;  %v681_v55 = vrot.slane %v676_v46, 2 }
 0x2c8   : > { %v656_v52 = vadd.f32 %v655_v48, %v650_v44  ;;  %v666_v53 = vrot.slane %v661_v49, 1  ;;  %v680_v54 = vrot.slane %v675_v50, 2 }
 0x2ca   : > { %v668_v56 = vsel %vm665_vm3, %v666_v53, %v667_v51  ;;  %v682_v58 = vsel %vm679_vm4, %v680_v54, %v681_v55 }
 0x2cb   : > { %v670_v57 = vadd.f32 %v668_v56, %v656_v52 }
 0x2cd   : > { %v684_v59 = vadd.f32 %v682_v58, %v670_v57 }
 0x2cf   : > { %v685_v60 = vsub.f32 0.0, %v684_v59 }
 0x2d1   : > { %v686_v61 = vmul.f32 1.442695, %v685_v60 }
 0x2d3   : > { %1865 = vpow2.f32 %v686_v61 }
 0x2dd   : > { %v1866_v62 = vpop.eup %1865 }
 0x2de   : > { %v688_v63 = vadd.f32 1.0, %v1866_v62 }
 0x2e0   : > { %1867 = vrcp.f32 %v688_v63 }
 0x2ea   : > { %v1868_v0 = vpop.eup %1867 }
 0x2eb   : > { %v2548_v1 = vmul.f32 %v1868_v0, %v684_v59 }
 0x2ed   : > { %v691_v3 = vpack.c.bf16 %v2548_v1, %v2548_v1 }
 0x2ef   : > { %1714 = vmatmul.mubr.msk.bf16.vlgmr.msra.gmra.mrb[0].mxu1 %vm724_vm5, %v691_v3 }
 0x3c2   : > { %v2553_v4 = vpop.f32.mrb[0].mxu1 }
 0x3c3   : > { %1129 = vrot.lane.b32.xlu1 %v2553_v4, %s2168_s10  ;;  %v1715_v5 = vpop.f32.mrb[1].mxu1  ;;  %v929_v6 = vrot.slane %v2553_v4, %v2536_v32  ;;  %v953_v9 = vrot.slane %v2553_v4, %v673_v31  ;;  %v989_v12 = vrot.slane %v2553_v4, %v988_v11  ;;  %v941_v14 = vrot.slane %v2553_v4, %v659_v30 }
 0x3c4   : > { %v765_v7 = vpop.f32.mrb[2].mxu1  ;;  %v1001_v15 = vrot.slane %v2553_v4, %v1000_v13  ;;  %v965_v16 = vrot.slane %v2553_v4, %v641_v28  ;;  %v977_v18 = vrot.slane %v2553_v4, %v976_v17  ;;  %v775_v21 = vadd.f32 %v1671_v20, %v2553_v4 }
 0x3c5   : > { %932 = vbcast.lane.b32.xlu0 %v929_v6, 320  ;;  %v1716_v8 = vpop.f32.mrb[3].mxu1  ;;  %v2170_v28 = vmov 1966171168  }
 0x3c6   : > { %v777_v22 = vand.u32 2147483647, %v775_v21  ;;  %v791_v29 = vunpack.c.l.s4 %v2170_v28  ;;  %v776_v34 = vmax.f32 %v775_v21, 0.0 }
 0x3c7   : > { %960 = vbcast.lane.b32.xlu1 %v953_v9, 328 }
 0x3c8   : > { %v778_v23 = vsub.f32 0.0, %v777_v22  ;;  %v792_v31 = vunpack.c.0.s8 %v791_v29 }
 0x3c9   : > { %936 = vbcast.lane.b32.xlu0 %v929_v6, 328 }
 0x3ca   : > { %v779_v24 = vmul.f32 1.442695, %v778_v23  ;;  %v2572_v35 = vsub.s32 %v792_v31, %v2530_v27 }
 0x3cb   : > { %996 = vbcast.lane.b32.xlu1 %v989_v12, 328 }
 0x3cc   : > { %1869 = vpow2.f32 %v779_v24 }
 0x3cd   : > { %944 = vbcast.lane.b32.xlu0 %v941_v14, 320 }
 0x3cf   : > { %1004 = vbcast.lane.b32.xlu1 %v1001_v15, 320 }
 0x3d1   : > { %948 = vbcast.lane.b32.xlu0 %v941_v14, 328 }
 0x3d5   : > { %956 = vbcast.lane.b32.xlu0 %v953_v9, 320 }
 0x3d6   : > { %v1870_v25 = vpop.eup %1869 }
 0x3d7   : > { %v781_v26 = vadd.f32 1.0, %v1870_v25 }
 0x3d9   : > { %968 = vbcast.lane.b32.xlu0 %v965_v16, 320  ;;  %1871 = vlog2.f32 %v781_v26 }
 0x3dd   : > { %972 = vbcast.lane.b32.xlu0 %v965_v16, 328 }
 0x3e1   : > { %980 = vbcast.lane.b32.xlu0 %v977_v18, 320 }
 0x3e3   : > { %v1872_v30 = vpop.eup %1871 }
 0x3e4   : > { %v783_v33 = vmul.f32 0.6931472, %v1872_v30 }
 0x3e5   : > { %984 = vbcast.lane.b32.xlu0 %v977_v18, 328 }
 0x3e6   : > { %v784_v37 = vadd.f32 %v783_v33, %v776_v34 }
 0x3e8   : > { %v796_v38 = vrot.slane %v784_v37, %v2572_v35  ;;  %v787_v43 = vmul.f32 %v784_v37, %v2548_v1  ;;  %v789_v51 = vcombine.high %v784_v37, %v784_v37 }
 0x3e9   : > { %992 = vbcast.lane.b32.xlu0 %v989_v12, 320 }
 0x3ea   : > { %v812_v39 = vrot.slane %v796_v38, %v2572_v35  ;;  %v804_v40 = vcombine.high %v796_v38, %v796_v38  ;;  %v1030_v46 = vrot.slane %v787_v43, %v2572_v35  ;;  %v1023_v47 = vcombine.high %v787_v43, %v787_v43 }
 0x3eb   : > { %v803_v60 = vrot.slane %v789_v51, %v2572_v35 }
 0x3ec   : > { %v2577_v41 = vrot.slane %v812_v39, %v2536_v32  ;;  %v826_v44 = vrot.slane %v804_v40, %v2572_v35  ;;  %v834_v48 = vcombine.high %v812_v39, %v812_v39  ;;  %v1046_v52 = vrot.slane %v1030_v46, %v2572_v35 }
 0x3ed   : > { %1008 = vbcast.lane.b32.xlu0 %v1001_v15, 328  ;;  %v2594_v53 = vrot.slane %v1023_v47, %v2572_v35  ;;  %v819_v7 = vrot.slane %v803_v60, %v2572_v35  ;;  %v1038_v13 = vcombine.high %v1030_v46, %v1030_v46  ;;  %v805_v18 = vcombine.high %v803_v60, %v803_v60 }
 0x3ee   : > { %v879_v45 = vmul.f32 %v2577_v41, %v2582_v42  ;;  %v2590_v50 = vrot.slane %v826_v44, %v2536_v32  ;;  %v836_v54 = vcombine.high %v826_v44, %v826_v44  ;;  %v2597_v55 = vrot.slane %v834_v48, %v2536_v32 }
 0x3ef   : > { %v1068_v57 = vcombine.high %v1046_v52, %v1046_v52  ;;  %v1039_v58 = vcombine.high %v2594_v53, %v2594_v53  ;;  %v2621_v11 = vrot.slane %v1046_v52, %v2536_v32  ;;  %v2630_v21 = vrot.slane %v819_v7, %v2536_v32 }
 0x3f0   : > { %v896_v49 = vmul.f32 1.442695, %v879_v45  ;;  %v881_v56 = vmul.f32 %v2590_v50, %v2582_v42  ;;  %v2605_v61 = vrot.slane %v836_v54, %v2536_v32  ;;  %v883_v63 = vmul.f32 %v2597_v55, %v2582_v42 }
 0x3f1   : > { %v2612_v3 = vrot.slane %v1068_v57, %v2536_v32  ;;  %v2615_v5 = vrot.slane %v1039_v58, %v2572_v35  ;;  %v1060_v25 = vrot.slane %v1038_v13, %v2572_v35  ;;  %v833_v29 = vrot.slane %v805_v18, %v2572_v35 }
 0x3f2   : > { %1873 = vpow2.f32 %v896_v49  ;;  %v900_v62 = vmul.f32 1.442695, %v881_v56  ;;  %v904_v8 = vmul.f32 1.442695, %v883_v63  ;;  %v885_v9 = vmul.f32 %v2605_v61, %v2582_v42 }
 0x3f3   : > { %v2627_v17 = vrot.slane %v2615_v5, %v2536_v32  ;;  %v887_v30 = vmul.f32 %v2630_v21, %v2582_v42  ;;  %v2642_v31 = vrot.slane %v1060_v25, %v2536_v32  ;;  %v2647_v39 = vrot.slane %v833_v29, %v2536_v32 }
 0x3f4   : > { %1875 = vpow2.f32 %v900_v62  ;;  %v908_v22 = vmul.f32 1.442695, %v885_v9  ;;  %v835_v40 = vcombine.high %v819_v7, %v819_v7  ;;  %v837_v51 = vcombine.high %v833_v29, %v833_v29 }
 0x3f5   : > { %1877 = vpow2.f32 %v904_v8  ;;  %v912_v43 = vmul.f32 1.442695, %v887_v30  ;;  %v889_v49 = vmul.f32 %v2647_v39, %v2582_v42  ;;  %v1070_v52 = vcombine.high %v1060_v25, %v1060_v25 }
 0x3f6   : > { %1879 = vpow2.f32 %v908_v22  ;;  %v2655_v48 = vrot.slane %v835_v40, %v2536_v32  ;;  %v2667_v62 = vrot.slane %v837_v51, %v2536_v32 }
 0x3f7   : > { %1881 = vpow2.f32 %v912_v43  ;;  %v2670_v63 = vrot.slane %v1070_v52, %v2536_v32  ;;  %v1370_v52 = vsub.f32 0.0, %v2540_v36 }
 0x3f8   : > { %v891_v60 = vmul.f32 %v2655_v48, %v2582_v42  ;;  %v893_v9 = vmul.f32 %v2667_v62, %v2582_v42 }
 0x3fa   : > { %v920_v8 = vmul.f32 1.442695, %v891_v60  ;;  %v2174_v60 = vmov 6  }
 0x3fc   : > { %v1874_v14 = vpop.eup %1873 }
 0x3fd   : > { %v1165_v23 = vmul.f32 0.0, %v1874_v14 }
 0x3fe   : > { %v1876_v33 = vpop.eup %1875 }
 0x3ff   : > { %v1878_v45 = vpop.eup %1877 }
 0x400   : > { %v1880_v56 = vpop.eup %1879 }
 0x401   : > { %v1882_v14 = vpop.eup %1881 }
 0x435   : > { %v1130_v59 = vpop.permute.xlu1 %1129 }
 0x436   : > { %1132 = vxpose.xlu1.b32.start.end [1/1] (short) (narrow) %v1130_v59, 16  ;;  %v916_v59 = vmul.f32 1.442695, %v889_v49 }
 0x437   : > { %v2609_v0 = vpop.permute.xlu0 %932 }
 0x438   : > { %1883 = vpow2.f32 %v916_v59  ;;  %v2173_v59 = vmov 1  }
 0x439   : > { %v961_v6 = vpop.permute.xlu1 %960  ;;  %1885 = vpow2.f32 %v920_v8  ;;  %v2177_v8 = vmov 5  }
 0x43a   : > { %v1117_v12 = vmul.f32 %v2612_v3, %v961_v6 }
 0x43b   : > { %v937_v15 = vpop.permute.xlu0 %936 }
 0x43c   : > { %v1113_v16 = vmul.f32 %v2621_v11, %v937_v15 }
 0x43d   : > { %v997_v20 = vpop.permute.xlu1 %996 }
 0x43e   : > { %v1123_v24 = vmul.f32 %v2627_v17, %v997_v20  ;;  %v2636_v28 = vadd.f32 %v1165_v23, %v1113_v16  ;;  %v2171_v16 = vmov 3   ;;  %v924_v20 = vmul.f32 1.442695, %v893_v9 }
 0x43f   : > { %v2634_v26 = vpop.permute.xlu0 %944 }
 0x440   : > { %v1190_v38 = vmul.f32 %v1876_v33, %v2636_v28  ;;  %1887 = vpow2.f32 %v924_v20 }
 0x441   : > { %v2703_v51 = vpop.permute.xlu1 %1004 }
 0x443   : > { %v949_v34 = vpop.permute.xlu0 %948 }
 0x444   : > { %v1115_v37 = vmul.f32 %v2642_v31, %v949_v34 }
 0x446   : > { %v2649_v44 = vadd.f32 %v1190_v38, %v1115_v37 }
 0x447   : > { %v2651_v46 = vpop.permute.xlu0 %956 }
 0x448   : > { %v1213_v47 = vmul.f32 %v1878_v45, %v2649_v44 }
 0x44a   : > { %v2659_v54 = vadd.f32 %v1213_v47, %v1117_v12  ;;  %v1053_v12 = vrot.slane %v2594_v53, %v2572_v35  ;;  %v1884_v53 = vpop.eup %1883 }
 0x44b   : > { %v2661_v57 = vpop.permute.xlu0 %968  ;;  %v1886_v37 = vpop.eup %1885 }
 0x44c   : > { %v1236_v58 = vmul.f32 %v1880_v56, %v2659_v54  ;;  %v2683_v22 = vrot.slane %v1053_v12, %v2536_v32  ;;  %v1069_v25 = vcombine.high %v1053_v12, %v1053_v12  ;;  %v1888_v47 = vpop.eup %1887 }
 0x44e   : > { %v2692_v33 = vrot.slane %v1069_v25, %v2536_v32 }
 0x44f   : > { %v973_v6 = vpop.permute.xlu0 %972 }
 0x450   : > { %v1119_v7 = vmul.f32 %v2670_v63, %v973_v6  ;;  %v2175_v6 = vmov 2  }
 0x452   : > { %v2677_v13 = vadd.f32 %v1236_v58, %v1119_v7  ;;  %v2172_v58 = vmov 4   ;;  %v2176_v7 = vmov 7  }
 0x453   : > { %v2679_v15 = vpop.permute.xlu0 %980 }
 0x454   : > { %1839 = vset.pattern.permute.xlu1 %v2171_v16  ;;  %v1259_v18 = vmul.f32 %v1882_v14, %v2677_v13 }
 0x457   : > { %v985_v23 = vpop.permute.xlu0 %984 }
 0x458   : > { %v1121_v42 = vmul.f32 %v2683_v22, %v985_v23 }
 0x45a   : > { %v2686_v35 = vadd.f32 %v1259_v18, %v1121_v42  ;;  %v1012_v18 = vsub.s32 7, %v2530_v27  ;;  %v1859_v27 = vld [vmem:[%s2921_s15] sm:$0xff]  }
 0x45b   : > { %v2688_v29 = vpop.permute.xlu0 %992  ;;  %1718 = vmatpush3.bf16.msra.mxu0 %v1859_v27  ;;  %v785_v42 = vld [vmem:[%s2920_s24] sm:$0xff] }
 0x45c   : > { %v1282_v30 = vmul.f32 %v1884_v53, %v2686_v35  ;;  %v1013_v20 = vrot.slane %v2553_v4, %v1012_v18  ;;  %v1860_v4 = vld [vmem:[%s2921_s15 + $0x8] sm:$0xff]   ;;  %1719 = vmatprep.subr.bf16.mxu0 %v2166_v10  ;;  %v878_v25 = vmul.f32 %v2577_v41, %v785_v42  ;;  %v1114_v41 = vmul.f32 %v2642_v31, %v2634_v26 }
 0x45d   : > { %v1118_v31 = vmul.f32 %v2670_v63, %v2661_v57  ;;  %v1122_v57 = vmul.f32 %v2627_v17, %v2688_v29  ;;  %v1124_v17 = vmul.f32 %v2692_v33, %v2703_v51 }
 0x45e   : > { %v2694_v34 = vadd.f32 %v1282_v30, %v1123_v24  ;;  %v1371_v24 = vmul.f32 1.442695, %v1370_v52  ;;  %v894_v53 = vmul.f32 1.442695, %v878_v25  ;;  %v880_v30 = vmul.f32 %v2590_v50, %v785_v42 }
 0x45f   : > { %v1009_v38 = vpop.permute.xlu0 %1008  ;;  %1720 = vmatpush3.bf16.msra.mxu0 %v1860_v4 }
 0x460   : > { %v1125_v40 = vmul.f32 %v2692_v33, %v1009_v38  ;;  %v1305_v43 = vmul.f32 %v1886_v37, %v2694_v34  ;;  %1889 = vpow2.f32 %v1371_v24  ;;  %1721 = vmatprep.subr.bf16.mxu0 %v2166_v10  ;;  %v898_v37 = vmul.f32 1.442695, %v880_v30 }
 0x461   : > { %v882_v38 = vmul.f32 %v2597_v55, %v785_v42  ;;  %v886_v55 = vmul.f32 %v2630_v21, %v785_v42  ;;  %v890_v21 = vmul.f32 %v2655_v48, %v785_v42 }
 0x462   : > { %v2698_v45 = vadd.f32 %v1305_v43, %v1125_v40 }
 0x463   : > { %v902_v43 = vmul.f32 1.442695, %v882_v38 }
 0x464   : > { %v2701_v49 = vmul.f32 %v1888_v47, %v2698_v45  ;;  %v884_v47 = vmul.f32 %v2605_v61, %v785_v42  ;;  %v888_v61 = vmul.f32 %v2647_v39, %v785_v42  ;;  %v1120_v39 = vmul.f32 %v2683_v22, %v2679_v15 }
 0x466   : > { %v906_v24 = vmul.f32 1.442695, %v884_v47  ;;  %v892_v47 = vmul.f32 %v2667_v62, %v785_v42 }
 0x468   : > { %v922_v42 = vmul.f32 1.442695, %v892_v47 }
 0x46a   : > { %v1890_v9 = vpop.eup %1889 }
 0x46b   : > { %v1373_v14 = vadd.f32 1.0, %v1890_v9  ;;  %v914_v9 = vmul.f32 1.442695, %v888_v61 }
 0x46d   : > { %1891 = vrcp.f32 %v1373_v14 }
 0x46e   : > { %1893 = vpow2.f32 %v894_v53 }
 0x46f   : > { %1895 = vpow2.f32 %v898_v37 }
 0x470   : > { %1897 = vpow2.f32 %v902_v43 }
 0x471   : > { %1899 = vpow2.f32 %v906_v24 }
 0x477   : > { %v1892_v23 = vpop.eup %1891 }
 0x478   : > { %v1894_v40 = vpop.eup %1893 }
 0x479   : > { %v1164_v52 = vmul.f32 0.0, %v1894_v40 }
 0x4b6   : > { %v1148_v56 = vpop.trf.xlu1 }
 0x4b7   : > { %1240 = vperm.xlu1 %1839, %v1148_v56   ;;  %1170 = vperm.xlu0 %1836, %v1148_v56  }
 0x4ba   : > { %v1149_v12 = vpop.trf.xlu1 }
 0x4bb   : > { %1840 = vset.pattern.permute.xlu1 %v2172_v58  ;;  %1837 = vset.pattern.permute.xlu0 %v2173_v59 }
 0x4bc   : > { %1263 = vperm.xlu1 %1840, %v1148_v56   ;;  %1194 = vperm.xlu0 %1837, %v1148_v56  }
 0x4c0   : > { %1842 = vset.pattern.permute.xlu1 %v2174_v60  ;;  %1838 = vset.pattern.permute.xlu0 %v2175_v6 }
 0x4c1   : > { %1309 = vperm.xlu1 %1842, %v1148_v56   ;;  %1217 = vperm.xlu0 %1838, %v1148_v56  }
 0x4c5   : > { %1843 = vset.pattern.permute.xlu1 %v2176_v7  ;;  %1841 = vset.pattern.permute.xlu0 %v2177_v8 }
 0x4c6   : > { %1332 = vperm.xlu1 %1843, %v1148_v56   ;;  %1286 = vperm.xlu0 %1841, %v1148_v56  }
 0x4ca   : > { %1845 = vset.pattern.permute.xlu1 %v2173_v59  ;;  %1844 = vset.pattern.permute.xlu0 %v2169_v19  ;;  %v1375_v19 = vmul.f32 %v1892_v23, %v2540_v36  ;;  %v1861_v36 = vld [vmem:[%s2921_s15 + $0x10] sm:$0xff]  }
 0x4cb   : > { %1198 = vperm.xlu1 %1845, %v1149_v12   ;;  %1175 = vperm.xlu0 %1844, %v1149_v12  }
 0x4cc   : > { %1722 = vmatpush3.bf16.msra.mxu0 %v1861_v36 }
 0x4cd   : > { %1723 = vmatprep.subr.bf16.mxu0 %v2166_v10  ;;  %v1112_v10 = vmul.f32 %v2621_v11, %v2609_v0  ;;  %v910_v0 = vmul.f32 1.442695, %v886_v55 }
 0x4cf   : > { %1846 = vset.pattern.permute.xlu1 %v2175_v6  ;;  %1847 = vset.pattern.permute.xlu0 %v2171_v16  ;;  %v1862_v16 = vld [vmem:[%s2921_s15 + $0x18] sm:$0xff]   ;;  %v1166_v56 = vadd.f32 %v1164_v52, %v1112_v10  ;;  %1901 = vpow2.f32 %v910_v0 }
 0x4d0   : > { %1221 = vperm.xlu1 %1846, %v1149_v12   ;;  %1244 = vperm.xlu0 %1847, %v1149_v12   ;;  %1903 = vpow2.f32 %v914_v9 }
 0x4d1   : > { %1724 = vmatpush3.bf16.msra.mxu0 %v1862_v16 }
 0x4d4   : > { %1848 = vset.pattern.permute.xlu1 %v2172_v58  ;;  %1850 = vset.pattern.permute.xlu0 %v2174_v60  ;;  %v1896_v58 = vpop.eup %1895  ;;  %v1116_v60 = vmul.f32 %v2612_v3, %v2651_v46 }
 0x4d5   : > { %1267 = vperm.xlu1 %1848, %v1149_v12   ;;  %1313 = vperm.xlu0 %1850, %v1149_v12   ;;  %v1189_v50 = vmul.f32 %v1896_v58, %v1166_v56  ;;  %v1898_v6 = vpop.eup %1897 }
 0x4d7   : > { %v1191_v59 = vadd.f32 %v1189_v50, %v1114_v41 }
 0x4d9   : > { %1849 = vset.pattern.permute.xlu1 %v2177_v8  ;;  %1016 = vbcast.lane.b32.xlu0 %v1013_v20, 320  ;;  %v1212_v11 = vmul.f32 %v1898_v6, %v1191_v59  ;;  %v1900_v8 = vpop.eup %1899 }
 0x4da   : > { %1290 = vperm.xlu1 %1849, %v1149_v12   ;;  %1852 = vset.pattern.permute.xlu0 %v2176_v7  ;;  %v1902_v23 = vpop.eup %1901 }
 0x4db   : > { %v1904_v63 = vpop.eup %1903 }
 0x4dd   : > { %1377 = vrot.lane.b32.xlu0 %v1375_v19, %s2178_s29  ;;  %s1490_s29 = sshll.u32 %s531_s9, 4  ;;  %s1491_s29 = int_to_ptr.vmem [resolvable:$true] %s1490_s29 }
 0x4de   : > { %1851 = vset.pattern.permute.xlu1 %v2176_v7  ;;  %v1214_v7 = vadd.f32 %v1212_v11, %v1116_v60  ;;  %s2051_s19 = scalar_lea.vmem %s1491_s29, 128 }
 0x4df   : > { %1336 = vperm.xlu1 %1851, %v1149_v12   ;;  %p2052_p6 = scmp.ne.s32.totalorder %s1491_s29, %s2051_s19 }
 0x4e0   : > { %v1235_v14 = vmul.f32 %v1900_v8, %v1214_v7 }
 0x4e1   : > { %p2053_p9 = pnand %p2052_p6, %p2924_p7 }
 0x4e2   : > { %v1237_v18 = vadd.f32 %v1235_v14, %v1118_v31  ;;  %v1071_v14 = vcombine.high %v2615_v5, %v2615_v5 }
 0x4e3   : > { %1020 = vbcast.lane.b32.xlu1 %v1013_v20, 328  ;;  %v918_v20 = vmul.f32 1.442695, %v890_v21  ;;  %p2054_p12 = pneg %p2053_p9 }
 0x4e4   : > { %v1258_v19 = vmul.f32 %v1902_v23, %v1237_v18 }
 0x4e5   : > { %1905 = vpow2.f32 %v918_v20 }
 0x4e6   : > { %v1260_v36 = vadd.f32 %v1258_v19, %v1120_v39  ;;  %1907 = vpow2.f32 %v922_v42 }
 0x4e8   : > { %v1281_v16 = vmul.f32 %v1904_v63, %v1260_v36 }
 0x4ea   : > { %v1283_v53 = vadd.f32 %v1281_v16, %v1122_v57 }
 0x4ef   : > { %v1906_v38 = vpop.eup %1905 }
 0x4f0   : > { %v1304_v22 = vmul.f32 %v1906_v38, %v1283_v53 }
 0x536   : > { %v1241_v12 = vpop.permute.xlu1 %1240  ;;  %v1171_v26 = vpop.permute.xlu0 %1170 }
 0x537   : > { %v1178_v30 = vmul.f32 %v1171_v26, %v1166_v56  ;;  %v1247_v29 = vmul.f32 %v1241_v12, %v1237_v18 }
 0x539   : > { %v1180_v52 = vsel %vm724_vm5, %v1178_v30, 0.0  ;;  %v1249_v0 = vsel %vm724_vm5, %v1247_v29, 0.0 }
 0x53b   : > { %v1264_v3 = vpop.permute.xlu1 %1263  ;;  %v1195_v46 = vpop.permute.xlu0 %1194 }
 0x53c   : > { %v1201_v37 = vmul.f32 %v1195_v46, %v1191_v59  ;;  %v2758_v59 = vadd.f32 %v1304_v22, %v1124_v17 }
 0x53e   : > { %v1203_v24 = vsel %vm724_vm5, %v1201_v37, 0.0 }
 0x540   : > { %v1310_v27 = vpop.permute.xlu1 %1309  ;;  %v1218_v4 = vpop.permute.xlu0 %1217 }
 0x541   : > { %v1224_v56 = vmul.f32 %v1218_v4, %v1214_v7  ;;  %v1316_v11 = vmul.f32 %v1310_v27, %v2758_v59 }
 0x543   : > { %v1226_v61 = vsel %vm724_vm5, %v1224_v56, 0.0  ;;  %v1318_v19 = vsel %vm724_vm5, %v1316_v11, 0.0 }
 0x545   : > { %v2747_v48 = vpop.permute.xlu1 %1332  ;;  %v1287_v25 = vpop.permute.xlu0 %1286 }
 0x546   : > { %v1293_v27 = vmul.f32 %v1287_v25, %v1283_v53  ;;  %v1103_v25 = vrot.slane %v1071_v14, %v2536_v32 }
 0x548   : > { %v1295_v53 = vsel %vm724_vm5, %v1293_v27, 0.0 }
 0x54a   : > { %v1199_v40 = vpop.permute.xlu1 %1198  ;;  %v1176_v15 = vpop.permute.xlu0 %1175 }
 0x54b   : > { %v1202_v43 = vmul.f32 %v1199_v40, %v2649_v44  ;;  %v1179_v10 = vmul.f32 %v1176_v15, %v2636_v28  ;;  %v1270_v44 = vmul.f32 %v1264_v3, %v1260_v36 }
 0x54d   : > { %v1204_v41 = vsel %vm724_vm5, %v1202_v43, 0.0  ;;  %v1181_v58 = vsel %vm724_vm5, %v1179_v10, 0.0 }
 0x54e   : > { %v1205_v50 = vadd.f32 %v1204_v41, %v1203_v24  ;;  %v1182_v55 = vadd.f32 %v1181_v58, %v1180_v52 }
 0x54f   : > { %v1222_v28 = vpop.permute.xlu1 %1221  ;;  %v1245_v62 = vpop.permute.xlu0 %1244 }
 0x550   : > { %v1206_v60 = vrot.slane %v1205_v50, 4  ;;  %v1183_v33 = vrot.slane %v1182_v55, 4  ;;  %v1225_v51 = vmul.f32 %v1222_v28, %v2659_v54  ;;  %v1248_v6 = vmul.f32 %v1245_v62, %v2677_v13  ;;  %v1908_v28 = vpop.eup %1907 }
 0x551   : > { %v1272_v54 = vsel %vm724_vm5, %v1270_v44, 0.0 }
 0x552   : > { %v1207_v7 = vadd.f32 %v1206_v60, %v1205_v50  ;;  %v1184_v8 = vadd.f32 %v1183_v33, %v1182_v55  ;;  %v1227_v9 = vsel %vm724_vm5, %v1225_v51, 0.0  ;;  %v1250_v12 = vsel %vm724_vm5, %v1248_v6, 0.0 }
 0x553   : > { %v1228_v26 = vadd.f32 %v1227_v9, %v1226_v61  ;;  %v1251_v31 = vadd.f32 %v1250_v12, %v1249_v0  ;;  %v1327_v6 = vmul.f32 %v1908_v28, %v2758_v59 }
 0x554   : > { %v1208_v13 = vrot.slane %v1207_v7, 2  ;;  %v1185_v21 = vrot.slane %v1184_v8, 2  ;;  %v1268_v18 = vpop.permute.xlu1 %1267  ;;  %v1314_v3 = vpop.permute.xlu0 %1313 }
 0x555   : > { %v1229_v46 = vrot.slane %v1228_v26, 4  ;;  %v1252_v20 = vrot.slane %v1251_v31, 4  ;;  %v1271_v39 = vmul.f32 %v1268_v18, %v2686_v35  ;;  %v1317_v23 = vmul.f32 %v1314_v3, %v2698_v45 }
 0x556   : > { %v1209_v4 = vadd.f32 %v1208_v13, %v1207_v7  ;;  %v1186_v36 = vadd.f32 %v1185_v21, %v1184_v8 }
 0x557   : > { %v1230_v57 = vadd.f32 %v1229_v46, %v1228_v26  ;;  %v1253_v5 = vadd.f32 %v1252_v20, %v1251_v31  ;;  %v1273_v63 = vsel %vm724_vm5, %v1271_v39, 0.0  ;;  %v1319_v16 = vsel %vm724_vm5, %v1317_v23, 0.0 }
 0x558   : > { %v1210_v30 = vrot.slane %v1209_v4, 1  ;;  %v1187_v37 = vrot.slane %v1186_v36, 1  ;;  %v1274_v38 = vadd.f32 %v1273_v63, %v1272_v54  ;;  %v1320_v40 = vadd.f32 %v1319_v16, %v1318_v19  ;;  %v1017_v10 = vpop.permute.xlu0 %1016 }
 0x559   : > { %v1231_v15 = vrot.slane %v1230_v57, 2  ;;  %v1254_v22 = vrot.slane %v1253_v5, 2  ;;  %v1291_v35 = vpop.permute.xlu1 %1290  ;;  %v1126_v55 = vmul.f32 %v1103_v25, %v1017_v10 }
 0x55a   : > { %v1275_v45 = vrot.slane %v1274_v38, 4  ;;  %v1321_v43 = vrot.slane %v1320_v40, 4  ;;  %v1294_v29 = vmul.f32 %v1291_v35, %v2694_v34  ;;  %v1211_v52 = vadd.f32 %v1210_v30, %v1209_v4 }
 0x55b   : > { %v1232_v47 = vadd.f32 %v1231_v15, %v1230_v57  ;;  %v1255_v17 = vadd.f32 %v1254_v22, %v1253_v5  ;;  %v1188_v24 = vadd.f32 %v1187_v37, %v1186_v36  ;;  %v1329_v7 = vadd.f32 %v1327_v6, %v1126_v55  ;;  %v1672_v37 = vld [vmem:[%s2922_s17] ss:$0 sm:$0xff]  ;;  %s2179_s17 = smov [#allocation12]  }
 0x55c   : > { %v1276_v56 = vadd.f32 %v1275_v45, %v1274_v38  ;;  %v1322_v41 = vadd.f32 %v1321_v43, %v1320_v40  ;;  %v1296_v44 = vsel %vm724_vm5, %v1294_v29, 0.0  ;;  %v1368_v40 = vmul.f32 %v1672_v37, %v2548_v1  ;;  %v1378_v35 = vpop.permute.xlu0 %1377  ;;  %s2055_s0 = sshll.u32 %s2179_s17, 4  ;;  %s2056_s0 = int_to_ptr.vmem [resolvable:$false] %s2055_s0 }
 0x55d   : > { %v1233_v58 = vrot.slane %v1232_v47, 1  ;;  %v1256_v50 = vrot.slane %v1255_v17, 1  ;;  %v1297_v42 = vadd.f32 %v1296_v44, %v1295_v53  ;;  %v1351_v34 = vsel %vm1350_vm6, %v1188_v24, %v1211_v52  ;;  %s2057_s1 = scalar_lea.vmem %s2056_s0, 256  ;;  %p2058_p3 = scmp.lt.s32.totalorder %s1491_s29, %s2056_s0 }
 0x55e   : > { %v1277_v62 = vrot.slane %v1276_v56, 2  ;;  %v1337_v32 = vpop.permute.xlu1 %1336  ;;  %v1323_v51 = vrot.slane %v1322_v41, 2  ;;  %v1339_v21 = vmul.f32 %v2747_v48, %v1329_v7  ;;  %p2059_p13 = scmp.lt.s32.totalorder %s2057_s1, %s2051_s19 }
 0x55f   : > { %v1234_v60 = vadd.f32 %v1233_v58, %v1232_v47  ;;  %v1257_v33 = vadd.f32 %v1256_v50, %v1255_v17  ;;  %v1298_v11 = vrot.slane %v1297_v42, 4 }
 0x560   : > { %v1278_v0 = vadd.f32 %v1277_v62, %v1276_v56  ;;  %v1324_v31 = vadd.f32 %v1323_v51, %v1322_v41  ;;  %v1341_v23 = vsel %vm724_vm5, %v1339_v21, 0.0  ;;  %p2060_p0 = por %p2059_p13, %p2058_p3 }
 0x561   : > { %v1353_v61 = vsel %vm1352_vm7, %v1351_v34, %v1234_v60  ;;  %v1299_v12 = vadd.f32 %v1298_v11, %v1297_v42 }
 0x562   : > { %v1354_v8 = vsel %vm636_vm2, %v1353_v61, %v1257_v33  ;;  %v1279_v9 = vrot.slane %v1278_v0, 1  ;;  %v1021_v26 = vpop.permute.xlu1 %1020  ;;  %v1325_v46 = vrot.slane %v1324_v31, 1  ;;  %p2061_p2 = pnand %p2060_p0, %p2054_p12 }
 0x563   : > { %v1127_v14 = vmul.f32 %v1103_v25, %v1021_v26  ;;  %v1300_v13 = vrot.slane %v1299_v12, 2 }
 0x564   : > { %v1280_v54 = vadd.f32 %v1279_v9, %v1278_v0  ;;  %v1326_v36 = vadd.f32 %v1325_v46, %v1324_v31 }
 0x565   : > { %v1330_v59 = vadd.f32 %v2701_v49, %v1127_v14  ;;  %v1301_v3 = vadd.f32 %v1300_v13, %v1299_v12 }
 0x566   : > { %v1356_v18 = vsel %vm1355_vm8, %v1354_v8, %v1280_v54 }
 0x567   : > { %v1340_v20 = vmul.f32 %v1337_v32, %v1330_v59  ;;  %v1302_v39 = vrot.slane %v1301_v3, 1 }
 0x569   : > { %v1342_v19 = vsel %vm724_vm5, %v1340_v20, 0.0  ;;  %v1303_v27 = vadd.f32 %v1302_v39, %v1301_v3 }
 0x56a   : > { %v1343_v4 = vadd.f32 %v1342_v19, %v1341_v23 }
 0x56b   : > { %v1358_v57 = vsel %vm1357_vm9, %v1356_v18, %v1303_v27 }
 0x56c   : > { %v1344_v5 = vrot.slane %v1343_v4, 4  ;;  %v1359_v48 = vsel %vm679_vm4, %v1358_v57, %v1326_v36 }
 0x56e   : > { %v1345_v49 = vadd.f32 %v1344_v5, %v1343_v4 }
 0x570   : > { %v1346_v63 = vrot.slane %v1345_v49, 2 }
 0x572   : > { %v1347_v16 = vadd.f32 %v1346_v63, %v1345_v49 }
 0x574   : > { %v1348_v30 = vrot.slane %v1347_v16, 1 }
 0x576   : > { %v1349_v38 = vadd.f32 %v1348_v30, %v1347_v16 }
 0x578   : > { %v1360_v15 = vsel %vm665_vm3, %v1359_v48, %v1349_v38 }
 0x579   : > { %v1369_v22 = vadd.f32 %v1368_v40, %v1360_v15 }
 0x57b   : > { %v1380_v45 = vmul.f32 %v1378_v35, %v1369_v22 }
 0x57d   : > { %v1381_v43 = vpack.c.bf16 %v1380_v45, %v1380_v45 }
 0x57f   : > { %1726 = vmatmul.mubr.msk.bf16.vlgmr.msra.gmra.mrb[4].mxu0 %vm724_vm5, %v1381_v43 }
 0x580   : > { %2064 = shalt.err (!%p2061_p2)
}
 0x581   : > { %s2065_s9 = scalar_lea.hbm %s2802_s21, 128  ;;  %s2069_s17 = scalar_lea.hbm %s2923_s22, 256 }
 0x582   : > { %p2066_p8 = scmp.ne.s32.totalorder %s2802_s21, %s2065_s9  ;;  %p2070_p11 = scmp.lt.u32.totalorder %s2802_s21, %s2923_s22 }
 0x583   : > { %p2071_p1 = scmp.lt.u32.totalorder %s2069_s17, %s2065_s9  ;;  %p2073_p6 = scmp.lt.u32.totalorder %s2065_s9, %s2802_s21 }
 0x584   : > { %p2067_p4 = pnand %p2066_p8, %p2924_p7 }
 0x585   : > { %p2072_p5 = por %p2071_p1, %p2070_p11 }
 0x586   : > { %p2068_p10 = pneg %p2067_p4 }
 0x587   : > { %p2074_p9 = por %p2073_p6, %p2072_p5 }
 0x589   : > { %p2075_p12 = pnand %p2074_p9, %p2068_p10 }
 0x58b   : > { %2078 = shalt.err (!%p2075_p12)
}
 0x58c   : > { %1748 = dma.vmem_to_hbm [thread:$0]  (%p2924_p7), %s1491_s29, 128, %s2802_s21, %s1464_s13  }
 0x58d   : > { %s524_s1 = scalar_lea.vmem [#allocation11], %s2471_s20  ;;  %s2925_s30 = sshll.u32 %s2272_s14, 7 }
 0x58e   : > { %s1477_s19 = sshll.u32 %s524_s1, 4  ;;  %s2926_s0 = sld [smem:[#allocation25_spill]]  ;;  %s2830_s19 = int_to_ptr.vmem [resolvable:$true] %s1477_s19 }
 0x58f   : > { %s1459_s9 = scalar_lea.sflag [#allocation4], %s2468_s4  ;;  %s2079_s21 = scalar_lea.vmem %s2830_s19, 128 }
 0x590   : > { %p2080_p3 = scmp.ne.s32.totalorder %s2830_s19, %s2079_s21  ;;  %s2180_s14 = smov [#allocation11]  }
 0x591   : > { %s2083_s20 = sshll.u32 %s2180_s14, 4  ;;  %s2084_s20 = int_to_ptr.vmem [resolvable:$false] %s2083_s20 }
 0x592   : > { %p2081_p13 = pnand %p2080_p3, %p2924_p7  ;;  %s2085_s29 = scalar_lea.vmem %s2084_s20, 256 }
 0x593   : > { %p2086_p2 = scmp.lt.s32.totalorder %s2830_s19, %s2084_s20  ;;  %p2087_p8 = scmp.lt.s32.totalorder %s2085_s29, %s2079_s21 }
 0x594   : > { %s2828_s17 = scalar_lea.hbm %s2926_s0, %s2925_s30  ;;  %p2082_p0 = pneg %p2081_p13 }
 0x595   : > { %p2088_p4 = por %p2087_p8, %p2086_p2 }
 0x597   : > { %p2089_p10 = pnand %p2088_p4, %p2082_p0 }
 0x652   : > { %v1451_v2 = vpop.f32.mrb[4].mxu0 }
 0x653   : > { %1457 = vst.msk [vmem:[%s524_s1] sm:$0xff] %vm540_vm0, %v1451_v2  ;;  %v1727_v1 = vpop.f32.mrb[5].mxu0 }
 0x654   : > { %v1454_v10 = vpop.f32.mrb[6].mxu0 }
 0x655   : > { %2092 = shalt.err (!%p2089_p10)
}
 0x656   : > { %s2093_s4 = scalar_lea.hbm %s2828_s17, 128  ;;  %s2097_s30 = scalar_lea.hbm %s2926_s0, 256 }
 0x657   : > { %p2094_p11 = scmp.ne.s32.totalorder %s2828_s17, %s2093_s4  ;;  %p2098_p6 = scmp.lt.u32.totalorder %s2828_s17, %s2926_s0 }
 0x658   : > { %p2099_p9 = scmp.lt.u32.totalorder %s2097_s30, %s2093_s4  ;;  %p2101_p3 = scmp.lt.u32.totalorder %s2093_s4, %s2828_s17 }
 0x659   : > { %p2095_p1 = pnand %p2094_p11, %p2924_p7 }
 0x65a   : > { %p2100_p12 = por %p2099_p9, %p2098_p6 }
 0x65b   : > { %p2096_p5 = pneg %p2095_p1 }
 0x65c   : > { %p2102_p13 = por %p2101_p3, %p2100_p12 }
 0x65e   : > { %p2103_p0 = pnand %p2102_p13, %p2096_p5 }
 0x660   : > { %2106 = shalt.err (!%p2103_p0)
}
 0x661   : > { %1747 = dma.vmem_to_hbm [thread:$0]  (%p2924_p7), %s2830_s19, 128, %s2828_s17, %s1459_s9   ;;  %v1728_v25 = vpop.f32.mrb[7].mxu0 }
 0x662 PF: > { %s1502_s21 = sand.u32 1, %s2145_s25   ;;  %p2927_p2 = scmp.ne.s32.totalorder %s2911_s23, 0 }
 0x663   : > { %p2928_p8 = scmp.ge.s32.totalorder %s2157_s28, 2  ;;  %s1503_s14 = scalar_lea.sflag [#allocation4], %s1502_s21 }
 0x665   : > { %p1769_p4 = pnand %p2928_p8, %p2927_p2 }
 0x667   : > { %2136 = dma.done.wait (!%p1769_p4), %s1503_s14, 128  }
 0x668   : > { %2138 = vsyncadd (!%p1769_p4), %s1503_s14, 4294967168  ;;  %s1512_s20 = scalar_lea.sflag [#allocation13], %s1502_s21 }
 0x669   : > { %2140 = dma.done.wait (!%p1769_p4), %s1512_s20, 128  }
 0x66a   : > { %2142 = vsyncadd (!%p1769_p4), %s1512_s20, 4294967168  ;;  %p32_p7 = scmp.ge.s32.totalorder %s2392_s18, 4   ;;  %s2929_s25 = smov %s2149_s26 }
 0x66b   : > { %s2930_s26 = smov %s2153_s27  ;;  %s2931_s27 = smov %s2403_s11 }
 0x66c   : > { %s2932_s28 = smov %s2392_s18  ;;  %34 = sbr.rel (!%p32_p7) target bundleno = 18 (0x12), region = 149 }
 0x673   :  { %1517 = vsyncpa [#allocation3], 1 }
 0x674   :  { %1519 = vsyncpa [#allocation3 + $0x1], 1 }
 0x675   :  { %1520 = vsyncpa [#allocation6], 1 }
 0x676   :  { %1521 = vsyncpa [#allocation9], 1 }
 0x677   :  { %1522 = vsyncpa [#allocation4], 1 }
 0x678   :  { %1524 = vsyncpa [#allocation4 + $0x1], 1 }
 0x679   :  { %1525 = vsyncpa [#allocation13], 1 }
 0x67a   :  { %1527 = vsyncpa [#allocation13 + $0x1], 1 }

</bundles_post_ra>
